<compile_context>
chip_gen: v6e
topology: v6e:2x2x1
jax: 0.10.0
libtpu: 0.0.40
codegen_flags: <defaults>
</compile_context>

<pallas_src>
import numpy as np
import jax
import jax.numpy as jnp
from jax import lax
from jax.experimental import pallas as pl
from jax.experimental.pallas import tpu as pltpu

EMBD_SIZE = 128
ENCODER_EMBD_DIM = 315
MAX_ACTION_LEN = 150
N_HEADS = 8
N_LAYERS = 3
HEAD_SIZE = EMBD_SIZE // N_HEADS
LN_EPS = 1e-5                      # torch.nn.LayerNorm default
ATT_SCALE = float(HEAD_SIZE) ** 0.5  # reference MULTIPLIES scores by sqrt(head_size) (intentional)


def _layernorm(x, g, b):
    mu = jnp.mean(x, axis=-1, keepdims=True)
    var = jnp.mean((x - mu) ** 2, axis=-1, keepdims=True)
    return (x - mu) * lax.rsqrt(var + LN_EPS) * g + b


def _softmax(x):
    m = jnp.max(x, axis=-1, keepdims=True)
    p = jnp.exp(x - m)
    return p * pl.reciprocal(jnp.sum(p, axis=-1, keepdims=True), approx=True)


def _gelu_exact(x):
    # nn.GELU() default (approximate='none'): 0.5*x*(1+erf(x/sqrt(2)))
    return 0.5 * x * (1.0 + lax.erf(x * (1.0 / np.sqrt(2.0))))


def _make_encoder_kernel(t_actual, t_pad):
    E = EMBD_SIZE
    HS = HEAD_SIZE

    def kernel(x_ref, ln1g_ref, ln1b_ref, ln2g_ref, ln2b_ref,
               wqkv_ref, wo_ref, bo_ref, w1_ref, b1_ref, w2_ref, b2_ref,
               o_ref, x_carry):
        l = pl.program_id(1)
        n_layers = pl.num_programs(1)

        # Load the batch-element activations into the carry on the first layer.
        @pl.when(l == 0)
        def _():
            x_carry[...] = x_ref[0]

        x = x_carry[...]                                            # (T, E) f32

        # ---- attention sublayer (residual taken from ln1(x), matching reference) ----
        xn = _layernorm(x, ln1g_ref[l], ln1b_ref[l])                # (T, E) f32

        qkv = jnp.dot(xn.astype(jnp.bfloat16), wqkv_ref[l],
                      preferred_element_type=jnp.float32)           # (T, 3E) f32
        qb = (qkv[:, :E] * ATT_SCALE).astype(jnp.bfloat16)          # scale q once
        kbT = qkv[:, E:2 * E].astype(jnp.bfloat16).T                # (E, T): single transpose
        vb = qkv[:, 2 * E:].astype(jnp.bfloat16)
        wo_l = wo_ref[l]                                            # (E, E) bf16

        if t_pad != t_actual:
            key_mask = lax.broadcasted_iota(jnp.int32, (t_pad, t_pad), 1) < t_actual
        else:
            key_mask = None

        att = jnp.zeros((t_pad, E), jnp.float32)
        for h in range(N_HEADS):                                    # unrolled, 8 heads of 16
            s = h * HS
            wei = jnp.dot(qb[:, s:s + HS], kbT[s:s + HS, :],
                          preferred_element_type=jnp.float32)       # (T, T)
            if key_mask is not None:
                wei = jnp.where(key_mask, wei, jnp.float32(-1e30))
            p = _softmax(wei)                                       # dropout: identity in eval
            ho = jnp.dot(p.astype(jnp.bfloat16), vb[:, s:s + HS],
                         preferred_element_type=jnp.float32)        # (T, HS)
            # output projection decomposed per head (no concatenate)
            att = att + jnp.dot(ho.astype(jnp.bfloat16), wo_l[s:s + HS, :],
                                preferred_element_type=jnp.float32)  # (T, E)
        att = att + bo_ref[l]

        x1 = xn + att

        # ---- feed-forward sublayer ----
        yn = _layernorm(x1, ln2g_ref[l], ln2b_ref[l])
        hdn = jnp.dot(yn.astype(jnp.bfloat16), w1_ref[l],
                      preferred_element_type=jnp.float32) + b1_ref[l]
        hdn = _gelu_exact(hdn)
        ff = jnp.dot(hdn.astype(jnp.bfloat16), w2_ref[l],
                     preferred_element_type=jnp.float32) + b2_ref[l]

        x2 = x1 + ff
        x_carry[...] = x2

        @pl.when(l == n_layers - 1)
        def _():
            o_ref[0] = x2

    return kernel


def encoder_blocks_fused(x, stacked):
    """x: (B, T, E) f32; stacked: tuple of layer-stacked parameter arrays."""
    B, T, E = x.shape
    t_pad = ((T + 7) // 8) * 8
    if t_pad != T:
        x = jnp.pad(x, ((0, 0), (0, t_pad - T), (0, 0)))
    ln1g, ln1b, ln2g, ln2b, wqkv, wo, bo, w1, b1, w2, b2 = stacked
    L = wqkv.shape[0]
    H4 = 4 * E

    def full(shape):
        return pl.BlockSpec(shape, lambda b, l: (0,) * len(shape))

    in_specs = [
        pl.BlockSpec((1, t_pad, E), lambda b, l: (b, 0, 0)),   # x
        full((L, 1, E)), full((L, 1, E)),                      # ln1 gamma/beta
        full((L, 1, E)), full((L, 1, E)),                      # ln2 gamma/beta
        full((L, E, 3 * E)),                                   # fused Wqkv (bf16)
        full((L, E, E)), full((L, 1, E)),                      # Wo (bf16), bo
        full((L, E, H4)), full((L, 1, H4)),                    # W1 (bf16), b1
        full((L, H4, E)), full((L, 1, E)),                     # W2 (bf16), b2
    ]

    out = pl.pallas_call(
        _make_encoder_kernel(T, t_pad),
        out_shape=jax.ShapeDtypeStruct((B, t_pad, E), jnp.float32),
        grid=(B, L),
        in_specs=in_specs,
        out_specs=pl.BlockSpec((1, t_pad, E), lambda b, l: (b, 0, 0)),
        scratch_shapes=[pltpu.VMEM((t_pad, E), jnp.float32)],
        compiler_params=pltpu.CompilerParams(
            dimension_semantics=("parallel", "arbitrary")),
    )(x, ln1g, ln1b, ln2g, ln2b, wqkv, wo, bo, w1, b1, w2, b2)
    return out[:, :T, :]


def sinusoidal_position_table():
    position = np.arange(MAX_ACTION_LEN, dtype=np.float32)[:, None]
    div_term = np.exp(np.arange(0, EMBD_SIZE, 2, dtype=np.float32)
                      * -(np.log(10000.0) / EMBD_SIZE))
    pe = np.zeros((MAX_ACTION_LEN, EMBD_SIZE), dtype=np.float32)
    pe[:, 0::2] = np.sin(position * div_term)
    pe[:, 1::2] = np.cos(position * div_term)
    return jnp.asarray(pe)


def init_encoder_params(key):
    """Synthetic init mirroring _init_weights: Linear/Embedding ~ N(0, 0.02), biases 0.
    Weight matrices are stored stacked over layers and in bf16 (x @ W layout)."""
    E, H4, L = EMBD_SIZE, 4 * EMBD_SIZE, N_LAYERS
    n_w = 6  # Wq, Wk, Wv, Wo, W1, W2 per layer
    keys = jax.random.split(key, 1 + L * n_w)
    emb = 0.02 * jax.random.normal(keys[0], (ENCODER_EMBD_DIM, E), jnp.float32)

    def wmat(k, shape):
        return (0.02 * jax.random.normal(k, shape, jnp.float32)).astype(jnp.bfloat16)

    wqkv_l, wo_l, w1_l, w2_l = [], [], [], []
    ki = 1
    for _ in range(L):
        wq = wmat(keys[ki + 0], (E, E))
        wk = wmat(keys[ki + 1], (E, E))
        wv = wmat(keys[ki + 2], (E, E))
        wqkv_l.append(jnp.concatenate([wq, wk, wv], axis=1))   # (E, 3E)
        wo_l.append(wmat(keys[ki + 3], (E, E)))
        w1_l.append(wmat(keys[ki + 4], (E, H4)))
        w2_l.append(wmat(keys[ki + 5], (H4, E)))
        ki += n_w

    stacked = (
        jnp.ones((L, 1, E), jnp.float32), jnp.zeros((L, 1, E), jnp.float32),   # ln1 g/b
        jnp.ones((L, 1, E), jnp.float32), jnp.zeros((L, 1, E), jnp.float32),   # ln2 g/b
        jnp.stack(wqkv_l),                                                     # (L, E, 3E) bf16
        jnp.stack(wo_l), jnp.zeros((L, 1, E), jnp.float32),                    # Wo, bo
        jnp.stack(w1_l), jnp.zeros((L, 1, H4), jnp.float32),                   # W1, b1
        jnp.stack(w2_l), jnp.zeros((L, 1, E), jnp.float32),                    # W2, b2
    )
    return emb, stacked


def encoder_forward(enc_indices, emb, pos_table, stacked):
    """enc_indices: (B, T) int32 in [0, ENCODER_EMBD_DIM)."""
    B, T = enc_indices.shape
    tok = jnp.take(emb, enc_indices, axis=0)      # (B, T, E) embedding gather (plain-JAX glue)
    pos = pos_table[:T][None, :, :]               # (1, T, E)
    x = (tok + pos).astype(jnp.float32)
    return encoder_blocks_fused(x, stacked)       # all 3 encoder blocks in one Pallas kernel


if __name__ == "__main__":
    key = jax.random.PRNGKey(0)
    k_params, k_idx = jax.random.split(key)

    emb, stacked = init_encoder_params(k_params)
    pos_table = sinusoidal_position_table()

    B, T = 2, 8
    enc_indices = jax.random.randint(k_idx, (B, T), 0, ENCODER_EMBD_DIM, dtype=jnp.int32)

    out = encoder_forward(enc_indices, emb, pos_table, stacked)
    jax.block_until_ready(out)
    assert out.shape == (B, T, EMBD_SIZE), out.shape
    assert bool(jnp.all(jnp.isfinite(out)))
    print("KERNEL_OK")
</pallas_src>

<mosaic_0001>
module attributes {stable_mosaic.version = 11 : i64} {
  func.func @kernel(%arg0: i32, %arg1: i32, %arg2: memref<1x8x128xf32, #tpu.memory_space<vmem>>, %arg3: memref<3x1x128xf32, #tpu.memory_space<vmem>>, %arg4: memref<3x1x128xf32, #tpu.memory_space<vmem>>, %arg5: memref<3x1x128xf32, #tpu.memory_space<vmem>>, %arg6: memref<3x1x128xf32, #tpu.memory_space<vmem>>, %arg7: memref<3x128x384xbf16, #tpu.memory_space<vmem>>, %arg8: memref<3x128x128xbf16, #tpu.memory_space<vmem>>, %arg9: memref<3x1x128xf32, #tpu.memory_space<vmem>>, %arg10: memref<3x128x512xbf16, #tpu.memory_space<vmem>>, %arg11: memref<3x1x512xf32, #tpu.memory_space<vmem>>, %arg12: memref<3x512x128xbf16, #tpu.memory_space<vmem>>, %arg13: memref<3x1x128xf32, #tpu.memory_space<vmem>>, %arg14: memref<1x8x128xf32, #tpu.memory_space<vmem>>, %arg15: memref<8x128xf32, #tpu.memory_space<vmem>>) attributes {dimension_semantics = [#tpu.dimension_semantics<parallel>, #tpu.dimension_semantics<arbitrary>], iteration_bounds = array<i64: 2, 3>, scalar_prefetch = 0 : i64, scratch_operands = 1 : i64, tpu.core_type = #tpu.core_type<tc>, window_params = [{transform_indices = @transform_0, window_bounds = array<i64: 1, 8, 128>}, {pipeline_mode = #tpu.pipeline_mode<synchronous>, transform_indices = @transform_1, window_bounds = array<i64: 3, 1, 128>}, {pipeline_mode = #tpu.pipeline_mode<synchronous>, transform_indices = @transform_2, window_bounds = array<i64: 3, 1, 128>}, {pipeline_mode = #tpu.pipeline_mode<synchronous>, transform_indices = @transform_3, window_bounds = array<i64: 3, 1, 128>}, {pipeline_mode = #tpu.pipeline_mode<synchronous>, transform_indices = @transform_4, window_bounds = array<i64: 3, 1, 128>}, {pipeline_mode = #tpu.pipeline_mode<synchronous>, transform_indices = @transform_5, window_bounds = array<i64: 3, 128, 384>}, {pipeline_mode = #tpu.pipeline_mode<synchronous>, transform_indices = @transform_6, window_bounds = array<i64: 3, 128, 128>}, {pipeline_mode = #tpu.pipeline_mode<synchronous>, transform_indices = @transform_7, window_bounds = array<i64: 3, 1, 128>}, {pipeline_mode = #tpu.pipeline_mode<synchronous>, transform_indices = @transform_8, window_bounds = array<i64: 3, 128, 512>}, {pipeline_mode = #tpu.pipeline_mode<synchronous>, transform_indices = @transform_9, window_bounds = array<i64: 3, 1, 512>}, {pipeline_mode = #tpu.pipeline_mode<synchronous>, transform_indices = @transform_10, window_bounds = array<i64: 3, 512, 128>}, {pipeline_mode = #tpu.pipeline_mode<synchronous>, transform_indices = @transform_11, window_bounds = array<i64: 3, 1, 128>}, {transform_indices = @transform_12, window_bounds = array<i64: 1, 8, 128>}]} {
    %c0_i32 = arith.constant 0 : i32
    %0 = arith.cmpi eq, %arg1, %c0_i32 : i32
    %1 = arith.extui %0 : i1 to i32
    %c0_i32_0 = arith.constant 0 : i32
    %2 = arith.cmpi ne, %1, %c0_i32_0 : i32
    scf.if %2 {
      %c0_84 = arith.constant 0 : index
      %c0_85 = arith.constant 0 : index
      %c0_86 = arith.constant 0 : index
      %277 = vector.load %arg2[%c0_84, %c0_85, %c0_86] : memref<1x8x128xf32, #tpu.memory_space<vmem>>, vector<1x8x128xf32>
      %278 = vector.shape_cast %277 : vector<1x8x128xf32> to vector<8x128xf32>
      %c0_87 = arith.constant 0 : index
      %c0_88 = arith.constant 0 : index
      %279 = vector.load %arg15[%c0_87, %c0_88] : memref<8x128xf32, #tpu.memory_space<vmem>>, vector<8x128xf32>
      tpu.vector_store %arg15[%c0_87, %c0_88], %278 {strides = array<i32>} : memref<8x128xf32, #tpu.memory_space<vmem>>, vector<8x128xf32>,
    } else {
    }
    %c0 = arith.constant 0 : index
    %c0_1 = arith.constant 0 : index
    %3 = vector.load %arg15[%c0, %c0_1] : memref<8x128xf32, #tpu.memory_space<vmem>>, vector<8x128xf32>
    %4 = arith.index_cast %arg1 : i32 to index
    %c0_2 = arith.constant 0 : index
    %c0_3 = arith.constant 0 : index
    %5 = vector.load %arg3[%4, %c0_2, %c0_3] : memref<3x1x128xf32, #tpu.memory_space<vmem>>, vector<1x1x128xf32>
    %6 = vector.shape_cast %5 : vector<1x1x128xf32> to vector<1x128xf32>
    %7 = arith.index_cast %arg1 : i32 to index
    %c0_4 = arith.constant 0 : index
    %c0_5 = arith.constant 0 : index
    %8 = vector.load %arg4[%7, %c0_4, %c0_5] : memref<3x1x128xf32, #tpu.memory_space<vmem>>, vector<1x1x128xf32>
    %9 = vector.shape_cast %8 : vector<1x1x128xf32> to vector<1x128xf32>
    %cst = arith.constant dense<0.000000e+00> : vector<8xf32>
    %10 = vector.multi_reduction <add>, %3, %cst [1] : vector<8x128xf32> to vector<8xf32>
    %11 = vector.shape_cast %10 : vector<8xf32> to vector<8x1xf32>
    %cst_6 = arith.constant 1.280000e+02 : f32
    %12 = vector.broadcast %cst_6 : f32 to vector<8x1xf32>
    %13 = arith.divf %11, %12 : vector<8x1xf32>
    %14 = vector.broadcast %13 : vector<8x1xf32> to vector<8x128xf32>
    %15 = arith.subf %3, %14 : vector<8x128xf32>
    %16 = arith.mulf %15, %15 : vector<8x128xf32>
    %cst_7 = arith.constant dense<0.000000e+00> : vector<8xf32>
    %17 = vector.multi_reduction <add>, %16, %cst_7 [1] : vector<8x128xf32> to vector<8xf32>
    %18 = vector.shape_cast %17 : vector<8xf32> to vector<8x1xf32>
    %cst_8 = arith.constant 1.280000e+02 : f32
    %19 = vector.broadcast %cst_8 : f32 to vector<8x1xf32>
    %20 = arith.divf %18, %19 : vector<8x1xf32>
    %21 = vector.broadcast %13 : vector<8x1xf32> to vector<8x128xf32>
    %22 = arith.subf %3, %21 : vector<8x128xf32>
    %cst_9 = arith.constant 9.99999974E-6 : f32
    %23 = vector.broadcast %cst_9 : f32 to vector<8x1xf32>
    %24 = arith.addf %20, %23 : vector<8x1xf32>
    %25 = math.rsqrt %24 : vector<8x1xf32>
    %26 = vector.broadcast %25 : vector<8x1xf32> to vector<8x128xf32>
    %27 = arith.mulf %22, %26 : vector<8x128xf32>
    %28 = vector.broadcast %6 : vector<1x128xf32> to vector<8x128xf32>
    %29 = arith.mulf %27, %28 : vector<8x128xf32>
    %30 = vector.broadcast %9 : vector<1x128xf32> to vector<8x128xf32>
    %31 = arith.addf %29, %30 : vector<8x128xf32>
    %32 = arith.truncf %31 : vector<8x128xf32> to vector<8x128xbf16>
    %33 = arith.index_cast %arg1 : i32 to index
    %c0_10 = arith.constant 0 : index
    %c0_11 = arith.constant 0 : index
    %34 = vector.load %arg7[%33, %c0_10, %c0_11] : memref<3x128x384xbf16, #tpu.memory_space<vmem>>, vector<1x128x384xbf16>
    %35 = vector.shape_cast %34 : vector<1x128x384xbf16> to vector<128x384xbf16>
    %cst_12 = arith.constant dense<0.000000e+00> : vector<8x384xf32>
    %36 = tpu.matmul %32, %35, %cst_12 {dimension_numbers = #tpu.dot_dimension_numbers<[1], [0], [0], [1], [0, 0, 1, 1], [], []>} : vector<8x128xbf16>, vector<128x384xbf16>, vector<8x384xf32> -> vector<8x384xf32>
    %37 = vector.extract_strided_slice %36 {offsets = [0, 0], sizes = [8, 128], strides = [1, 1]} : vector<8x384xf32> to vector<8x128xf32>
    %cst_13 = arith.constant 4.000000e+00 : f32
    %38 = vector.broadcast %cst_13 : f32 to vector<8x128xf32>
    %39 = arith.mulf %37, %38 : vector<8x128xf32>
    %40 = arith.truncf %39 : vector<8x128xf32> to vector<8x128xbf16>
    %41 = vector.extract_strided_slice %36 {offsets = [0, 128], sizes = [8, 128], strides = [1, 1]} : vector<8x384xf32> to vector<8x128xf32>
    %42 = arith.truncf %41 : vector<8x128xf32> to vector<8x128xbf16>
    %43 = tpu.transpose %42, [1, 0] : vector<8x128xbf16> -> vector<128x8xbf16>
    %44 = vector.extract_strided_slice %36 {offsets = [0, 256], sizes = [8, 128], strides = [1, 1]} : vector<8x384xf32> to vector<8x128xf32>
    %45 = arith.truncf %44 : vector<8x128xf32> to vector<8x128xbf16>
    %46 = arith.index_cast %arg1 : i32 to index
    %c0_14 = arith.constant 0 : index
    %c0_15 = arith.constant 0 : index
    %47 = vector.load %arg8[%46, %c0_14, %c0_15] : memref<3x128x128xbf16, #tpu.memory_space<vmem>>, vector<1x128x128xbf16>
    %48 = vector.shape_cast %47 : vector<1x128x128xbf16> to vector<128x128xbf16>
    %cst_16 = arith.constant 0.000000e+00 : f32
    %49 = vector.broadcast %cst_16 : f32 to vector<8x128xf32>
    %50 = vector.extract_strided_slice %40 {offsets = [0, 0], sizes = [8, 16], strides = [1, 1]} : vector<8x128xbf16> to vector<8x16xbf16>
    %51 = vector.extract_strided_slice %43 {offsets = [0, 0], sizes = [16, 8], strides = [1, 1]} : vector<128x8xbf16> to vector<16x8xbf16>
    %cst_17 = arith.constant dense<0.000000e+00> : vector<8x8xf32>
    %52 = tpu.matmul %50, %51, %cst_17 {dimension_numbers = #tpu.dot_dimension_numbers<[1], [0], [0], [1], [0, 0, 1, 1], [], []>} : vector<8x16xbf16>, vector<16x8xbf16>, vector<8x8xf32> -> vector<8x8xf32>
    %cst_18 = arith.constant dense<0xFF800000> : vector<8xf32>
    %53 = vector.multi_reduction <maximumf>, %52, %cst_18 [1] : vector<8x8xf32> to vector<8xf32>
    %54 = vector.shape_cast %53 : vector<8xf32> to vector<8x1xf32>
    %55 = vector.broadcast %54 : vector<8x1xf32> to vector<8x8xf32>
    %56 = arith.subf %52, %55 : vector<8x8xf32>
    %57 = math.exp %56 : vector<8x8xf32>
    %cst_19 = arith.constant dense<0.000000e+00> : vector<8xf32>
    %58 = vector.multi_reduction <add>, %57, %cst_19 [1] : vector<8x8xf32> to vector<8xf32>
    %59 = vector.shape_cast %58 : vector<8xf32> to vector<8x1xf32>
    %60 = tpu.reciprocal %59 {approx = true} : vector<8x1xf32> -> vector<8x1xf32>
    %61 = vector.broadcast %60 : vector<8x1xf32> to vector<8x8xf32>
    %62 = arith.mulf %57, %61 : vector<8x8xf32>
    %63 = arith.truncf %62 : vector<8x8xf32> to vector<8x8xbf16>
    %64 = vector.extract_strided_slice %45 {offsets = [0, 0], sizes = [8, 16], strides = [1, 1]} : vector<8x128xbf16> to vector<8x16xbf16>
    %cst_20 = arith.constant dense<0.000000e+00> : vector<8x16xf32>
    %65 = tpu.matmul %63, %64, %cst_20 {dimension_numbers = #tpu.dot_dimension_numbers<[1], [0], [0], [1], [0, 0, 1, 1], [], []>} : vector<8x8xbf16>, vector<8x16xbf16>, vector<8x16xf32> -> vector<8x16xf32>
    %66 = arith.truncf %65 : vector<8x16xf32> to vector<8x16xbf16>
    %67 = vector.extract_strided_slice %48 {offsets = [0, 0], sizes = [16, 128], strides = [1, 1]} : vector<128x128xbf16> to vector<16x128xbf16>
    %cst_21 = arith.constant dense<0.000000e+00> : vector<8x128xf32>
    %68 = tpu.matmul %66, %67, %cst_21 {dimension_numbers = #tpu.dot_dimension_numbers<[1], [0], [0], [1], [0, 0, 1, 1], [], []>} : vector<8x16xbf16>, vector<16x128xbf16>, vector<8x128xf32> -> vector<8x128xf32>
    %69 = arith.addf %49, %68 : vector<8x128xf32>
    %70 = vector.extract_strided_slice %40 {offsets = [0, 16], sizes = [8, 16], strides = [1, 1]} : vector<8x128xbf16> to vector<8x16xbf16>
    %71 = vector.extract_strided_slice %43 {offsets = [16, 0], sizes = [16, 8], strides = [1, 1]} : vector<128x8xbf16> to vector<16x8xbf16>
    %cst_22 = arith.constant dense<0.000000e+00> : vector<8x8xf32>
    %72 = tpu.matmul %70, %71, %cst_22 {dimension_numbers = #tpu.dot_dimension_numbers<[1], [0], [0], [1], [0, 0, 1, 1], [], []>} : vector<8x16xbf16>, vector<16x8xbf16>, vector<8x8xf32> -> vector<8x8xf32>
    %cst_23 = arith.constant dense<0xFF800000> : vector<8xf32>
    %73 = vector.multi_reduction <maximumf>, %72, %cst_23 [1] : vector<8x8xf32> to vector<8xf32>
    %74 = vector.shape_cast %73 : vector<8xf32> to vector<8x1xf32>
    %75 = vector.broadcast %74 : vector<8x1xf32> to vector<8x8xf32>
    %76 = arith.subf %72, %75 : vector<8x8xf32>
    %77 = math.exp %76 : vector<8x8xf32>
    %cst_24 = arith.constant dense<0.000000e+00> : vector<8xf32>
    %78 = vector.multi_reduction <add>, %77, %cst_24 [1] : vector<8x8xf32> to vector<8xf32>
    %79 = vector.shape_cast %78 : vector<8xf32> to vector<8x1xf32>
    %80 = tpu.reciprocal %79 {approx = true} : vector<8x1xf32> -> vector<8x1xf32>
    %81 = vector.broadcast %80 : vector<8x1xf32> to vector<8x8xf32>
    %82 = arith.mulf %77, %81 : vector<8x8xf32>
    %83 = arith.truncf %82 : vector<8x8xf32> to vector<8x8xbf16>
    %84 = vector.extract_strided_slice %45 {offsets = [0, 16], sizes = [8, 16], strides = [1, 1]} : vector<8x128xbf16> to vector<8x16xbf16>
    %cst_25 = arith.constant dense<0.000000e+00> : vector<8x16xf32>
    %85 = tpu.matmul %83, %84, %cst_25 {dimension_numbers = #tpu.dot_dimension_numbers<[1], [0], [0], [1], [0, 0, 1, 1], [], []>} : vector<8x8xbf16>, vector<8x16xbf16>, vector<8x16xf32> -> vector<8x16xf32>
    %86 = arith.truncf %85 : vector<8x16xf32> to vector<8x16xbf16>
    %87 = vector.extract_strided_slice %48 {offsets = [16, 0], sizes = [16, 128], strides = [1, 1]} : vector<128x128xbf16> to vector<16x128xbf16>
    %cst_26 = arith.constant dense<0.000000e+00> : vector<8x128xf32>
    %88 = tpu.matmul %86, %87, %cst_26 {dimension_numbers = #tpu.dot_dimension_numbers<[1], [0], [0], [1], [0, 0, 1, 1], [], []>} : vector<8x16xbf16>, vector<16x128xbf16>, vector<8x128xf32> -> vector<8x128xf32>
    %89 = arith.addf %69, %88 : vector<8x128xf32>
    %90 = vector.extract_strided_slice %40 {offsets = [0, 32], sizes = [8, 16], strides = [1, 1]} : vector<8x128xbf16> to vector<8x16xbf16>
    %91 = vector.extract_strided_slice %43 {offsets = [32, 0], sizes = [16, 8], strides = [1, 1]} : vector<128x8xbf16> to vector<16x8xbf16>
    %cst_27 = arith.constant dense<0.000000e+00> : vector<8x8xf32>
    %92 = tpu.matmul %90, %91, %cst_27 {dimension_numbers = #tpu.dot_dimension_numbers<[1], [0], [0], [1], [0, 0, 1, 1], [], []>} : vector<8x16xbf16>, vector<16x8xbf16>, vector<8x8xf32> -> vector<8x8xf32>
    %cst_28 = arith.constant dense<0xFF800000> : vector<8xf32>
    %93 = vector.multi_reduction <maximumf>, %92, %cst_28 [1] : vector<8x8xf32> to vector<8xf32>
    %94 = vector.shape_cast %93 : vector<8xf32> to vector<8x1xf32>
    %95 = vector.broadcast %94 : vector<8x1xf32> to vector<8x8xf32>
    %96 = arith.subf %92, %95 : vector<8x8xf32>
    %97 = math.exp %96 : vector<8x8xf32>
    %cst_29 = arith.constant dense<0.000000e+00> : vector<8xf32>
    %98 = vector.multi_reduction <add>, %97, %cst_29 [1] : vector<8x8xf32> to vector<8xf32>
    %99 = vector.shape_cast %98 : vector<8xf32> to vector<8x1xf32>
    %100 = tpu.reciprocal %99 {approx = true} : vector<8x1xf32> -> vector<8x1xf32>
    %101 = vector.broadcast %100 : vector<8x1xf32> to vector<8x8xf32>
    %102 = arith.mulf %97, %101 : vector<8x8xf32>
    %103 = arith.truncf %102 : vector<8x8xf32> to vector<8x8xbf16>
    %104 = vector.extract_strided_slice %45 {offsets = [0, 32], sizes = [8, 16], strides = [1, 1]} : vector<8x128xbf16> to vector<8x16xbf16>
    %cst_30 = arith.constant dense<0.000000e+00> : vector<8x16xf32>
    %105 = tpu.matmul %103, %104, %cst_30 {dimension_numbers = #tpu.dot_dimension_numbers<[1], [0], [0], [1], [0, 0, 1, 1], [], []>} : vector<8x8xbf16>, vector<8x16xbf16>, vector<8x16xf32> -> vector<8x16xf32>
    %106 = arith.truncf %105 : vector<8x16xf32> to vector<8x16xbf16>
    %107 = vector.extract_strided_slice %48 {offsets = [32, 0], sizes = [16, 128], strides = [1, 1]} : vector<128x128xbf16> to vector<16x128xbf16>
    %cst_31 = arith.constant dense<0.000000e+00> : vector<8x128xf32>
    %108 = tpu.matmul %106, %107, %cst_31 {dimension_numbers = #tpu.dot_dimension_numbers<[1], [0], [0], [1], [0, 0, 1, 1], [], []>} : vector<8x16xbf16>, vector<16x128xbf16>, vector<8x128xf32> -> vector<8x128xf32>
    %109 = arith.addf %89, %108 : vector<8x128xf32>
    %110 = vector.extract_strided_slice %40 {offsets = [0, 48], sizes = [8, 16], strides = [1, 1]} : vector<8x128xbf16> to vector<8x16xbf16>
    %111 = vector.extract_strided_slice %43 {offsets = [48, 0], sizes = [16, 8], strides = [1, 1]} : vector<128x8xbf16> to vector<16x8xbf16>
    %cst_32 = arith.constant dense<0.000000e+00> : vector<8x8xf32>
    %112 = tpu.matmul %110, %111, %cst_32 {dimension_numbers = #tpu.dot_dimension_numbers<[1], [0], [0], [1], [0, 0, 1, 1], [], []>} : vector<8x16xbf16>, vector<16x8xbf16>, vector<8x8xf32> -> vector<8x8xf32>
    %cst_33 = arith.constant dense<0xFF800000> : vector<8xf32>
    %113 = vector.multi_reduction <maximumf>, %112, %cst_33 [1] : vector<8x8xf32> to vector<8xf32>
    %114 = vector.shape_cast %113 : vector<8xf32> to vector<8x1xf32>
    %115 = vector.broadcast %114 : vector<8x1xf32> to vector<8x8xf32>
    %116 = arith.subf %112, %115 : vector<8x8xf32>
    %117 = math.exp %116 : vector<8x8xf32>
    %cst_34 = arith.constant dense<0.000000e+00> : vector<8xf32>
    %118 = vector.multi_reduction <add>, %117, %cst_34 [1] : vector<8x8xf32> to vector<8xf32>
    %119 = vector.shape_cast %118 : vector<8xf32> to vector<8x1xf32>
    %120 = tpu.reciprocal %119 {approx = true} : vector<8x1xf32> -> vector<8x1xf32>
    %121 = vector.broadcast %120 : vector<8x1xf32> to vector<8x8xf32>
    %122 = arith.mulf %117, %121 : vector<8x8xf32>
    %123 = arith.truncf %122 : vector<8x8xf32> to vector<8x8xbf16>
    %124 = vector.extract_strided_slice %45 {offsets = [0, 48], sizes = [8, 16], strides = [1, 1]} : vector<8x128xbf16> to vector<8x16xbf16>
    %cst_35 = arith.constant dense<0.000000e+00> : vector<8x16xf32>
    %125 = tpu.matmul %123, %124, %cst_35 {dimension_numbers = #tpu.dot_dimension_numbers<[1], [0], [0], [1], [0, 0, 1, 1], [], []>} : vector<8x8xbf16>, vector<8x16xbf16>, vector<8x16xf32> -> vector<8x16xf32>
    %126 = arith.truncf %125 : vector<8x16xf32> to vector<8x16xbf16>
    %127 = vector.extract_strided_slice %48 {offsets = [48, 0], sizes = [16, 128], strides = [1, 1]} : vector<128x128xbf16> to vector<16x128xbf16>
    %cst_36 = arith.constant dense<0.000000e+00> : vector<8x128xf32>
    %128 = tpu.matmul %126, %127, %cst_36 {dimension_numbers = #tpu.dot_dimension_numbers<[1], [0], [0], [1], [0, 0, 1, 1], [], []>} : vector<8x16xbf16>, vector<16x128xbf16>, vector<8x128xf32> -> vector<8x128xf32>
    %129 = arith.addf %109, %128 : vector<8x128xf32>
    %130 = vector.extract_strided_slice %40 {offsets = [0, 64], sizes = [8, 16], strides = [1, 1]} : vector<8x128xbf16> to vector<8x16xbf16>
    %131 = vector.extract_strided_slice %43 {offsets = [64, 0], sizes = [16, 8], strides = [1, 1]} : vector<128x8xbf16> to vector<16x8xbf16>
    %cst_37 = arith.constant dense<0.000000e+00> : vector<8x8xf32>
    %132 = tpu.matmul %130, %131, %cst_37 {dimension_numbers = #tpu.dot_dimension_numbers<[1], [0], [0], [1], [0, 0, 1, 1], [], []>} : vector<8x16xbf16>, vector<16x8xbf16>, vector<8x8xf32> -> vector<8x8xf32>
    %cst_38 = arith.constant dense<0xFF800000> : vector<8xf32>
    %133 = vector.multi_reduction <maximumf>, %132, %cst_38 [1] : vector<8x8xf32> to vector<8xf32>
    %134 = vector.shape_cast %133 : vector<8xf32> to vector<8x1xf32>
    %135 = vector.broadcast %134 : vector<8x1xf32> to vector<8x8xf32>
    %136 = arith.subf %132, %135 : vector<8x8xf32>
    %137 = math.exp %136 : vector<8x8xf32>
    %cst_39 = arith.constant dense<0.000000e+00> : vector<8xf32>
    %138 = vector.multi_reduction <add>, %137, %cst_39 [1] : vector<8x8xf32> to vector<8xf32>
    %139 = vector.shape_cast %138 : vector<8xf32> to vector<8x1xf32>
    %140 = tpu.reciprocal %139 {approx = true} : vector<8x1xf32> -> vector<8x1xf32>
    %141 = vector.broadcast %140 : vector<8x1xf32> to vector<8x8xf32>
    %142 = arith.mulf %137, %141 : vector<8x8xf32>
    %143 = arith.truncf %142 : vector<8x8xf32> to vector<8x8xbf16>
    %144 = vector.extract_strided_slice %45 {offsets = [0, 64], sizes = [8, 16], strides = [1, 1]} : vector<8x128xbf16> to vector<8x16xbf16>
    %cst_40 = arith.constant dense<0.000000e+00> : vector<8x16xf32>
    %145 = tpu.matmul %143, %144, %cst_40 {dimension_numbers = #tpu.dot_dimension_numbers<[1], [0], [0], [1], [0, 0, 1, 1], [], []>} : vector<8x8xbf16>, vector<8x16xbf16>, vector<8x16xf32> -> vector<8x16xf32>
    %146 = arith.truncf %145 : vector<8x16xf32> to vector<8x16xbf16>
    %147 = vector.extract_strided_slice %48 {offsets = [64, 0], sizes = [16, 128], strides = [1, 1]} : vector<128x128xbf16> to vector<16x128xbf16>
    %cst_41 = arith.constant dense<0.000000e+00> : vector<8x128xf32>
    %148 = tpu.matmul %146, %147, %cst_41 {dimension_numbers = #tpu.dot_dimension_numbers<[1], [0], [0], [1], [0, 0, 1, 1], [], []>} : vector<8x16xbf16>, vector<16x128xbf16>, vector<8x128xf32> -> vector<8x128xf32>
    %149 = arith.addf %129, %148 : vector<8x128xf32>
    %150 = vector.extract_strided_slice %40 {offsets = [0, 80], sizes = [8, 16], strides = [1, 1]} : vector<8x128xbf16> to vector<8x16xbf16>
    %151 = vector.extract_strided_slice %43 {offsets = [80, 0], sizes = [16, 8], strides = [1, 1]} : vector<128x8xbf16> to vector<16x8xbf16>
    %cst_42 = arith.constant dense<0.000000e+00> : vector<8x8xf32>
    %152 = tpu.matmul %150, %151, %cst_42 {dimension_numbers = #tpu.dot_dimension_numbers<[1], [0], [0], [1], [0, 0, 1, 1], [], []>} : vector<8x16xbf16>, vector<16x8xbf16>, vector<8x8xf32> -> vector<8x8xf32>
    %cst_43 = arith.constant dense<0xFF800000> : vector<8xf32>
    %153 = vector.multi_reduction <maximumf>, %152, %cst_43 [1] : vector<8x8xf32> to vector<8xf32>
    %154 = vector.shape_cast %153 : vector<8xf32> to vector<8x1xf32>
    %155 = vector.broadcast %154 : vector<8x1xf32> to vector<8x8xf32>
    %156 = arith.subf %152, %155 : vector<8x8xf32>
    %157 = math.exp %156 : vector<8x8xf32>
    %cst_44 = arith.constant dense<0.000000e+00> : vector<8xf32>
    %158 = vector.multi_reduction <add>, %157, %cst_44 [1] : vector<8x8xf32> to vector<8xf32>
    %159 = vector.shape_cast %158 : vector<8xf32> to vector<8x1xf32>
    %160 = tpu.reciprocal %159 {approx = true} : vector<8x1xf32> -> vector<8x1xf32>
    %161 = vector.broadcast %160 : vector<8x1xf32> to vector<8x8xf32>
    %162 = arith.mulf %157, %161 : vector<8x8xf32>
    %163 = arith.truncf %162 : vector<8x8xf32> to vector<8x8xbf16>
    %164 = vector.extract_strided_slice %45 {offsets = [0, 80], sizes = [8, 16], strides = [1, 1]} : vector<8x128xbf16> to vector<8x16xbf16>
    %cst_45 = arith.constant dense<0.000000e+00> : vector<8x16xf32>
    %165 = tpu.matmul %163, %164, %cst_45 {dimension_numbers = #tpu.dot_dimension_numbers<[1], [0], [0], [1], [0, 0, 1, 1], [], []>} : vector<8x8xbf16>, vector<8x16xbf16>, vector<8x16xf32> -> vector<8x16xf32>
    %166 = arith.truncf %165 : vector<8x16xf32> to vector<8x16xbf16>
    %167 = vector.extract_strided_slice %48 {offsets = [80, 0], sizes = [16, 128], strides = [1, 1]} : vector<128x128xbf16> to vector<16x128xbf16>
    %cst_46 = arith.constant dense<0.000000e+00> : vector<8x128xf32>
    %168 = tpu.matmul %166, %167, %cst_46 {dimension_numbers = #tpu.dot_dimension_numbers<[1], [0], [0], [1], [0, 0, 1, 1], [], []>} : vector<8x16xbf16>, vector<16x128xbf16>, vector<8x128xf32> -> vector<8x128xf32>
    %169 = arith.addf %149, %168 : vector<8x128xf32>
    %170 = vector.extract_strided_slice %40 {offsets = [0, 96], sizes = [8, 16], strides = [1, 1]} : vector<8x128xbf16> to vector<8x16xbf16>
    %171 = vector.extract_strided_slice %43 {offsets = [96, 0], sizes = [16, 8], strides = [1, 1]} : vector<128x8xbf16> to vector<16x8xbf16>
    %cst_47 = arith.constant dense<0.000000e+00> : vector<8x8xf32>
    %172 = tpu.matmul %170, %171, %cst_47 {dimension_numbers = #tpu.dot_dimension_numbers<[1], [0], [0], [1], [0, 0, 1, 1], [], []>} : vector<8x16xbf16>, vector<16x8xbf16>, vector<8x8xf32> -> vector<8x8xf32>
    %cst_48 = arith.constant dense<0xFF800000> : vector<8xf32>
    %173 = vector.multi_reduction <maximumf>, %172, %cst_48 [1] : vector<8x8xf32> to vector<8xf32>
    %174 = vector.shape_cast %173 : vector<8xf32> to vector<8x1xf32>
    %175 = vector.broadcast %174 : vector<8x1xf32> to vector<8x8xf32>
    %176 = arith.subf %172, %175 : vector<8x8xf32>
    %177 = math.exp %176 : vector<8x8xf32>
    %cst_49 = arith.constant dense<0.000000e+00> : vector<8xf32>
    %178 = vector.multi_reduction <add>, %177, %cst_49 [1] : vector<8x8xf32> to vector<8xf32>
    %179 = vector.shape_cast %178 : vector<8xf32> to vector<8x1xf32>
    %180 = tpu.reciprocal %179 {approx = true} : vector<8x1xf32> -> vector<8x1xf32>
    %181 = vector.broadcast %180 : vector<8x1xf32> to vector<8x8xf32>
    %182 = arith.mulf %177, %181 : vector<8x8xf32>
    %183 = arith.truncf %182 : vector<8x8xf32> to vector<8x8xbf16>
    %184 = vector.extract_strided_slice %45 {offsets = [0, 96], sizes = [8, 16], strides = [1, 1]} : vector<8x128xbf16> to vector<8x16xbf16>
    %cst_50 = arith.constant dense<0.000000e+00> : vector<8x16xf32>
    %185 = tpu.matmul %183, %184, %cst_50 {dimension_numbers = #tpu.dot_dimension_numbers<[1], [0], [0], [1], [0, 0, 1, 1], [], []>} : vector<8x8xbf16>, vector<8x16xbf16>, vector<8x16xf32> -> vector<8x16xf32>
    %186 = arith.truncf %185 : vector<8x16xf32> to vector<8x16xbf16>
    %187 = vector.extract_strided_slice %48 {offsets = [96, 0], sizes = [16, 128], strides = [1, 1]} : vector<128x128xbf16> to vector<16x128xbf16>
    %cst_51 = arith.constant dense<0.000000e+00> : vector<8x128xf32>
    %188 = tpu.matmul %186, %187, %cst_51 {dimension_numbers = #tpu.dot_dimension_numbers<[1], [0], [0], [1], [0, 0, 1, 1], [], []>} : vector<8x16xbf16>, vector<16x128xbf16>, vector<8x128xf32> -> vector<8x128xf32>
    %189 = arith.addf %169, %188 : vector<8x128xf32>
    %190 = vector.extract_strided_slice %40 {offsets = [0, 112], sizes = [8, 16], strides = [1, 1]} : vector<8x128xbf16> to vector<8x16xbf16>
    %191 = vector.extract_strided_slice %43 {offsets = [112, 0], sizes = [16, 8], strides = [1, 1]} : vector<128x8xbf16> to vector<16x8xbf16>
    %cst_52 = arith.constant dense<0.000000e+00> : vector<8x8xf32>
    %192 = tpu.matmul %190, %191, %cst_52 {dimension_numbers = #tpu.dot_dimension_numbers<[1], [0], [0], [1], [0, 0, 1, 1], [], []>} : vector<8x16xbf16>, vector<16x8xbf16>, vector<8x8xf32> -> vector<8x8xf32>
    %cst_53 = arith.constant dense<0xFF800000> : vector<8xf32>
    %193 = vector.multi_reduction <maximumf>, %192, %cst_53 [1] : vector<8x8xf32> to vector<8xf32>
    %194 = vector.shape_cast %193 : vector<8xf32> to vector<8x1xf32>
    %195 = vector.broadcast %194 : vector<8x1xf32> to vector<8x8xf32>
    %196 = arith.subf %192, %195 : vector<8x8xf32>
    %197 = math.exp %196 : vector<8x8xf32>
    %cst_54 = arith.constant dense<0.000000e+00> : vector<8xf32>
    %198 = vector.multi_reduction <add>, %197, %cst_54 [1] : vector<8x8xf32> to vector<8xf32>
    %199 = vector.shape_cast %198 : vector<8xf32> to vector<8x1xf32>
    %200 = tpu.reciprocal %199 {approx = true} : vector<8x1xf32> -> vector<8x1xf32>
    %201 = vector.broadcast %200 : vector<8x1xf32> to vector<8x8xf32>
    %202 = arith.mulf %197, %201 : vector<8x8xf32>
    %203 = arith.truncf %202 : vector<8x8xf32> to vector<8x8xbf16>
    %204 = vector.extract_strided_slice %45 {offsets = [0, 112], sizes = [8, 16], strides = [1, 1]} : vector<8x128xbf16> to vector<8x16xbf16>
    %cst_55 = arith.constant dense<0.000000e+00> : vector<8x16xf32>
    %205 = tpu.matmul %203, %204, %cst_55 {dimension_numbers = #tpu.dot_dimension_numbers<[1], [0], [0], [1], [0, 0, 1, 1], [], []>} : vector<8x8xbf16>, vector<8x16xbf16>, vector<8x16xf32> -> vector<8x16xf32>
    %206 = arith.truncf %205 : vector<8x16xf32> to vector<8x16xbf16>
    %207 = vector.extract_strided_slice %48 {offsets = [112, 0], sizes = [16, 128], strides = [1, 1]} : vector<128x128xbf16> to vector<16x128xbf16>
    %cst_56 = arith.constant dense<0.000000e+00> : vector<8x128xf32>
    %208 = tpu.matmul %206, %207, %cst_56 {dimension_numbers = #tpu.dot_dimension_numbers<[1], [0], [0], [1], [0, 0, 1, 1], [], []>} : vector<8x16xbf16>, vector<16x128xbf16>, vector<8x128xf32> -> vector<8x128xf32>
    %209 = arith.addf %189, %208 : vector<8x128xf32>
    %210 = arith.index_cast %arg1 : i32 to index
    %c0_57 = arith.constant 0 : index
    %c0_58 = arith.constant 0 : index
    %211 = vector.load %arg9[%210, %c0_57, %c0_58] : memref<3x1x128xf32, #tpu.memory_space<vmem>>, vector<1x1x128xf32>
    %212 = vector.shape_cast %211 : vector<1x1x128xf32> to vector<1x128xf32>
    %213 = vector.broadcast %212 : vector<1x128xf32> to vector<8x128xf32>
    %214 = arith.addf %209, %213 : vector<8x128xf32>
    %215 = arith.addf %31, %214 : vector<8x128xf32>
    %216 = arith.index_cast %arg1 : i32 to index
    %c0_59 = arith.constant 0 : index
    %c0_60 = arith.constant 0 : index
    %217 = vector.load %arg5[%216, %c0_59, %c0_60] : memref<3x1x128xf32, #tpu.memory_space<vmem>>, vector<1x1x128xf32>
    %218 = vector.shape_cast %217 : vector<1x1x128xf32> to vector<1x128xf32>
    %219 = arith.index_cast %arg1 : i32 to index
    %c0_61 = arith.constant 0 : index
    %c0_62 = arith.constant 0 : index
    %220 = vector.load %arg6[%219, %c0_61, %c0_62] : memref<3x1x128xf32, #tpu.memory_space<vmem>>, vector<1x1x128xf32>
    %221 = vector.shape_cast %220 : vector<1x1x128xf32> to vector<1x128xf32>
    %cst_63 = arith.constant dense<0.000000e+00> : vector<8xf32>
    %222 = vector.multi_reduction <add>, %215, %cst_63 [1] : vector<8x128xf32> to vector<8xf32>
    %223 = vector.shape_cast %222 : vector<8xf32> to vector<8x1xf32>
    %cst_64 = arith.constant 1.280000e+02 : f32
    %224 = vector.broadcast %cst_64 : f32 to vector<8x1xf32>
    %225 = arith.divf %223, %224 : vector<8x1xf32>
    %226 = vector.broadcast %225 : vector<8x1xf32> to vector<8x128xf32>
    %227 = arith.subf %215, %226 : vector<8x128xf32>
    %228 = arith.mulf %227, %227 : vector<8x128xf32>
    %cst_65 = arith.constant dense<0.000000e+00> : vector<8xf32>
    %229 = vector.multi_reduction <add>, %228, %cst_65 [1] : vector<8x128xf32> to vector<8xf32>
    %230 = vector.shape_cast %229 : vector<8xf32> to vector<8x1xf32>
    %cst_66 = arith.constant 1.280000e+02 : f32
    %231 = vector.broadcast %cst_66 : f32 to vector<8x1xf32>
    %232 = arith.divf %230, %231 : vector<8x1xf32>
    %233 = vector.broadcast %225 : vector<8x1xf32> to vector<8x128xf32>
    %234 = arith.subf %215, %233 : vector<8x128xf32>
    %cst_67 = arith.constant 9.99999974E-6 : f32
    %235 = vector.broadcast %cst_67 : f32 to vector<8x1xf32>
    %236 = arith.addf %232, %235 : vector<8x1xf32>
    %237 = math.rsqrt %236 : vector<8x1xf32>
    %238 = vector.broadcast %237 : vector<8x1xf32> to vector<8x128xf32>
    %239 = arith.mulf %234, %238 : vector<8x128xf32>
    %240 = vector.broadcast %218 : vector<1x128xf32> to vector<8x128xf32>
    %241 = arith.mulf %239, %240 : vector<8x128xf32>
    %242 = vector.broadcast %221 : vector<1x128xf32> to vector<8x128xf32>
    %243 = arith.addf %241, %242 : vector<8x128xf32>
    %244 = arith.truncf %243 : vector<8x128xf32> to vector<8x128xbf16>
    %245 = arith.index_cast %arg1 : i32 to index
    %c0_68 = arith.constant 0 : index
    %c0_69 = arith.constant 0 : index
    %246 = vector.load %arg10[%245, %c0_68, %c0_69] : memref<3x128x512xbf16, #tpu.memory_space<vmem>>, vector<1x128x512xbf16>
    %247 = vector.shape_cast %246 : vector<1x128x512xbf16> to vector<128x512xbf16>
    %cst_70 = arith.constant dense<0.000000e+00> : vector<8x512xf32>
    %248 = tpu.matmul %244, %247, %cst_70 {dimension_numbers = #tpu.dot_dimension_numbers<[1], [0], [0], [1], [0, 0, 1, 1], [], []>} : vector<8x128xbf16>, vector<128x512xbf16>, vector<8x512xf32> -> vector<8x512xf32>
    %249 = arith.index_cast %arg1 : i32 to index
    %c0_71 = arith.constant 0 : index
    %c0_72 = arith.constant 0 : index
    %250 = vector.load %arg11[%249, %c0_71, %c0_72] : memref<3x1x512xf32, #tpu.memory_space<vmem>>, vector<1x1x512xf32>
    %251 = vector.shape_cast %250 : vector<1x1x512xf32> to vector<1x512xf32>
    %252 = vector.broadcast %251 : vector<1x512xf32> to vector<8x512xf32>
    %253 = arith.addf %248, %252 : vector<8x512xf32>
    %cst_73 = arith.constant 5.000000e-01 : f32
    %254 = vector.broadcast %cst_73 : f32 to vector<8x512xf32>
    %255 = arith.mulf %254, %253 : vector<8x512xf32>
    %cst_74 = arith.constant 0.707106769 : f32
    %256 = vector.broadcast %cst_74 : f32 to vector<8x512xf32>
    %257 = arith.mulf %253, %256 : vector<8x512xf32>
    %258 = math.erf %257 : vector<8x512xf32>
    %cst_75 = arith.constant 1.000000e+00 : f32
    %259 = vector.broadcast %cst_75 : f32 to vector<8x512xf32>
    %260 = arith.addf %259, %258 : vector<8x512xf32>
    %261 = arith.mulf %255, %260 : vector<8x512xf32>
    %262 = arith.truncf %261 : vector<8x512xf32> to vector<8x512xbf16>
    %263 = arith.index_cast %arg1 : i32 to index
    %c0_76 = arith.constant 0 : index
    %c0_77 = arith.constant 0 : index
    %264 = vector.load %arg12[%263, %c0_76, %c0_77] : memref<3x512x128xbf16, #tpu.memory_space<vmem>>, vector<1x512x128xbf16>
    %265 = vector.shape_cast %264 : vector<1x512x128xbf16> to vector<512x128xbf16>
    %cst_78 = arith.constant dense<0.000000e+00> : vector<8x128xf32>
    %266 = tpu.matmul %262, %265, %cst_78 {dimension_numbers = #tpu.dot_dimension_numbers<[1], [0], [0], [1], [0, 0, 1, 1], [], []>} : vector<8x512xbf16>, vector<512x128xbf16>, vector<8x128xf32> -> vector<8x128xf32>
    %267 = arith.index_cast %arg1 : i32 to index
    %c0_79 = arith.constant 0 : index
    %c0_80 = arith.constant 0 : index
    %268 = vector.load %arg13[%267, %c0_79, %c0_80] : memref<3x1x128xf32, #tpu.memory_space<vmem>>, vector<1x1x128xf32>
    %269 = vector.shape_cast %268 : vector<1x1x128xf32> to vector<1x128xf32>
    %270 = vector.broadcast %269 : vector<1x128xf32> to vector<8x128xf32>
    %271 = arith.addf %266, %270 : vector<8x128xf32>
    %272 = arith.addf %215, %271 : vector<8x128xf32>
    %c0_81 = arith.constant 0 : index
    %c0_82 = arith.constant 0 : index
    %273 = vector.load %arg15[%c0_81, %c0_82] : memref<8x128xf32, #tpu.memory_space<vmem>>, vector<8x128xf32>
    tpu.vector_store %arg15[%c0_81, %c0_82], %272 {strides = array<i32>} : memref<8x128xf32, #tpu.memory_space<vmem>>, vector<8x128xf32>,
    %c2_i32 = arith.constant 2 : i32
    %274 = arith.cmpi eq, %arg1, %c2_i32 : i32
    %275 = arith.extui %274 : i1 to i32
    %c0_i32_83 = arith.constant 0 : i32
    %276 = arith.cmpi ne, %275, %c0_i32_83 : i32
    scf.if %276 {
      %c0_84 = arith.constant 0 : index
      %c0_85 = arith.constant 0 : index
      %c0_86 = arith.constant 0 : index
      %277 = vector.load %arg14[%c0_84, %c0_85, %c0_86] : memref<1x8x128xf32, #tpu.memory_space<vmem>>, vector<1x8x128xf32>
      %278 = vector.shape_cast %277 : vector<1x8x128xf32> to vector<8x128xf32>
      %279 = vector.shape_cast %272 : vector<8x128xf32> to vector<1x8x128xf32>
      tpu.vector_store %arg14[%c0_84, %c0_85, %c0_86], %279 {strides = array<i32>} : memref<1x8x128xf32, #tpu.memory_space<vmem>>, vector<1x8x128xf32>,
    } else {
    }
    return
  }
  func.func @transform_0(%arg0: i32, %arg1: i32) -> (i32, i32, i32) {
    %c0_i32 = arith.constant 0 : i32
    %c0_i32_0 = arith.constant 0 : i32
    %c0_i32_1 = arith.constant 0 : i32
    return %arg0, %c0_i32, %c0_i32_0 : i32, i32, i32
  }
  func.func @transform_1(%arg0: i32, %arg1: i32) -> (i32, i32, i32) {
    %c0_i32 = arith.constant 0 : i32
    %c0_i32_0 = arith.constant 0 : i32
    %c0_i32_1 = arith.constant 0 : i32
    %c0_i32_2 = arith.constant 0 : i32
    return %c0_i32, %c0_i32_0, %c0_i32_1 : i32, i32, i32
  }
  func.func @transform_2(%arg0: i32, %arg1: i32) -> (i32, i32, i32) {
    %c0_i32 = arith.constant 0 : i32
    %c0_i32_0 = arith.constant 0 : i32
    %c0_i32_1 = arith.constant 0 : i32
    %c0_i32_2 = arith.constant 0 : i32
    return %c0_i32, %c0_i32_0, %c0_i32_1 : i32, i32, i32
  }
  func.func @transform_3(%arg0: i32, %arg1: i32) -> (i32, i32, i32) {
    %c0_i32 = arith.constant 0 : i32
    %c0_i32_0 = arith.constant 0 : i32
    %c0_i32_1 = arith.constant 0 : i32
    %c0_i32_2 = arith.constant 0 : i32
    return %c0_i32, %c0_i32_0, %c0_i32_1 : i32, i32, i32
  }
  func.func @transform_4(%arg0: i32, %arg1: i32) -> (i32, i32, i32) {
    %c0_i32 = arith.constant 0 : i32
    %c0_i32_0 = arith.constant 0 : i32
    %c0_i32_1 = arith.constant 0 : i32
    %c0_i32_2 = arith.constant 0 : i32
    return %c0_i32, %c0_i32_0, %c0_i32_1 : i32, i32, i32
  }
  func.func @transform_5(%arg0: i32, %arg1: i32) -> (i32, i32, i32) {
    %c0_i32 = arith.constant 0 : i32
    %c0_i32_0 = arith.constant 0 : i32
    %c0_i32_1 = arith.constant 0 : i32
    %c0_i32_2 = arith.constant 0 : i32
    return %c0_i32, %c0_i32_0, %c0_i32_1 : i32, i32, i32
  }
  func.func @transform_6(%arg0: i32, %arg1: i32) -> (i32, i32, i32) {
    %c0_i32 = arith.constant 0 : i32
    %c0_i32_0 = arith.constant 0 : i32
    %c0_i32_1 = arith.constant 0 : i32
    %c0_i32_2 = arith.constant 0 : i32
    return %c0_i32, %c0_i32_0, %c0_i32_1 : i32, i32, i32
  }
  func.func @transform_7(%arg0: i32, %arg1: i32) -> (i32, i32, i32) {
    %c0_i32 = arith.constant 0 : i32
    %c0_i32_0 = arith.constant 0 : i32
    %c0_i32_1 = arith.constant 0 : i32
    %c0_i32_2 = arith.constant 0 : i32
    return %c0_i32, %c0_i32_0, %c0_i32_1 : i32, i32, i32
  }
  func.func @transform_8(%arg0: i32, %arg1: i32) -> (i32, i32, i32) {
    %c0_i32 = arith.constant 0 : i32
    %c0_i32_0 = arith.constant 0 : i32
    %c0_i32_1 = arith.constant 0 : i32
    %c0_i32_2 = arith.constant 0 : i32
    return %c0_i32, %c0_i32_0, %c0_i32_1 : i32, i32, i32
  }
  func.func @transform_9(%arg0: i32, %arg1: i32) -> (i32, i32, i32) {
    %c0_i32 = arith.constant 0 : i32
    %c0_i32_0 = arith.constant 0 : i32
    %c0_i32_1 = arith.constant 0 : i32
    %c0_i32_2 = arith.constant 0 : i32
    return %c0_i32, %c0_i32_0, %c0_i32_1 : i32, i32, i32
  }
  func.func @transform_10(%arg0: i32, %arg1: i32) -> (i32, i32, i32) {
    %c0_i32 = arith.constant 0 : i32
    %c0_i32_0 = arith.constant 0 : i32
    %c0_i32_1 = arith.constant 0 : i32
    %c0_i32_2 = arith.constant 0 : i32
    return %c0_i32, %c0_i32_0, %c0_i32_1 : i32, i32, i32
  }
  func.func @transform_11(%arg0: i32, %arg1: i32) -> (i32, i32, i32) {
    %c0_i32 = arith.constant 0 : i32
    %c0_i32_0 = arith.constant 0 : i32
    %c0_i32_1 = arith.constant 0 : i32
    %c0_i32_2 = arith.constant 0 : i32
    return %c0_i32, %c0_i32_0, %c0_i32_1 : i32, i32, i32
  }
  func.func @transform_12(%arg0: i32, %arg1: i32) -> (i32, i32, i32) {
    %c0_i32 = arith.constant 0 : i32
    %c0_i32_0 = arith.constant 0 : i32
    %c0_i32_1 = arith.constant 0 : i32
    return %arg0, %c0_i32, %c0_i32_0 : i32, i32, i32
  }
}

</mosaic_0001>

<bundles_post_ra>
// kernel: tpu_custom_call.1
= control target key start
LH: loop header
LB: loop body
LE: loop exit
PB: predicated region body
PF: predicated region fallthrough
CT: control target
= control target key end

     0   :  { %s4886_s0 = inlined_call_operand.hbm [shape: f32[2,8,128], index: 0, kind: input, shape index: {}]   ;;  %s4887_s1 = inlined_call_operand.hbm [shape: f32[3,1,128], index: 1, kind: input, shape index: {}]   ;;  %s4888_s2 = inlined_call_operand.vmem [shape: f32[3,1,128], index: 2, kind: input, shape index: {}]   ;;  %s4889_s3 = inlined_call_operand.hbm [shape: f32[3,1,128], index: 3, kind: input, shape index: {}]   ;;  %s4890_s4 = inlined_call_operand.hbm [shape: f32[3,1,128], index: 4, kind: input, shape index: {}]   ;;  %s4891_s5 = inlined_call_operand.hbm [shape: bf16[3,128,384], index: 5, kind: input, shape index: {}]   ;;  %s4892_s6 = inlined_call_operand.hbm [shape: bf16[3,128,128], index: 6, kind: input, shape index: {}]   ;;  %s4893_s7 = inlined_call_operand.hbm [shape: f32[3,1,128], index: 7, kind: input, shape index: {}]   ;;  %s4894_s8 = inlined_call_operand.hbm [shape: bf16[3,128,512], index: 8, kind: input, shape index: {}]   ;;  %s4895_s9 = inlined_call_operand.vmem [shape: f32[3,1,512], index: 9, kind: input, shape index: {}]   ;;  %s4896_s10 = inlined_call_operand.hbm [shape: bf16[3,512,128], index: 10, kind: input, shape index: {}]   ;;  %s4897_s11 = inlined_call_operand.vmem [shape: f32[3,1,128], index: 11, kind: input, shape index: {}]   ;;  %s4898_s12 = inlined_call_operand.hbm [shape: f32[2,8,128], index: 12, kind: output, shape index: {}]  }
   0x1   :  { %4909 = sst [smem:[#allocation27_spill]] %s4887_s1 }
   0x2   :  { %4910 = sst [smem:[#allocation28_spill]] %s4889_s3 }
   0x3   :  { %4911 = sst [smem:[#allocation29_spill]] %s4890_s4 }
   0x4   :  { %4912 = sst [smem:[#allocation30_spill]] %s4891_s5 }
   0x5   :  { %4913 = sst [smem:[#allocation31_spill]] %s4892_s6 }
   0x6   :  { %4914 = sst [smem:[#allocation32_spill]] %s4893_s7 }
   0x7   :  { %4915 = sst [smem:[#allocation33_spill]] %s4894_s8 }
   0x8   :  { %4916 = sst [smem:[#allocation34_spill]] %s4896_s10 }
   0x9   :  { %4917 = sst [smem:[#allocation35_spill]] %s4897_s11 }
   0xa   :  { %4918 = sst [smem:[#allocation36_spill]] %s4898_s12 }
   0xb   :  { %17 = vsyncpa [#allocation4], 0 }
   0xc   :  { %19 = vsyncpa [#allocation4 + $0x1], 0 }
   0xd   :  { %20 = vsyncpa [#allocation7], 0 }
   0xe   :  { %21 = vsyncpa [#allocation10], 0 }
   0xf   :  { %22 = vsyncpa [#allocation13], 0 }
  0x10   :  { %23 = vsyncpa [#allocation16], 0 }
  0x11   :  { %24 = vsyncpa [#allocation5], 0 }
  0x12   :  { %26 = vsyncpa [#allocation5 + $0x1], 0  ;;  %s4269_s21 = smov 0   ;;  %s4271_s22 = smov 0  }
  0x13   :  { %s4273_s23 = smov 0   ;;  %s4275_s24 = smov 0  }
  0x14   :  { %s4277_s25 = smov 0   ;;  %s4279_s26 = smov 0  }
  0x15   :  { %s4281_s27 = smov 0   ;;  %s4283_s28 = smov 0  }
  0x16 LB: > { %4919 = sst [smem:[#allocation25_spill]] %s4163_s25  ;;  %s4899_s29 = sadd.s32 4294967295, %s4175_s28   ;;  %s4175_s28 = sphi %s4283_s28, %s32_s28   ;;  %s4171_s27 = sphi %s4281_s27, %s4955_s27   ;;  %s4167_s26 = sphi %s4279_s26, %s4954_s26   ;;  %s4163_s25 = sphi %s4277_s25, %s4953_s25   ;;  %s4159_s24 = sphi %s4275_s24, %s4952_s24   ;;  %s4155_s23 = sphi %s4273_s23, %s4951_s23   ;;  %s4151_s22 = sphi %s4271_s22, %s4950_s22   ;;  %s4147_s21 = sphi %s4269_s21, %s4949_s21  }
  0x17   : > { %p3056_p0 = scmp.ge.s32.totalorder %s4175_s28, 1  ;;  %p4313_p1 = scmp.eq.s32.totalorder %s4899_s29, 0 }
  0x18   : > { %p332_p2 = scmp.lt.s32.totalorder %s4175_s28, 7  ;;  %s4177_s14 = smov [#allocation6]  }
  0x19   : > { %s344_s15 = sshll.u32 %s4177_s14, 4  ;;  %s4178_s17 = smov [#allocation9]   ;;  %s345_s15 = int_to_ptr.vmem [resolvable:$true] %s344_s15 }
  0x1a   : > { %p4318_p3 = pnand %p3056_p0, %p332_p2  ;;  %s373_s18 = sshll.u32 %s4178_s17, 4  ;;  %s4330_s18 = int_to_ptr.vmem [resolvable:$true] %s373_s18 }
  0x1b   : > { %s4179_s19 = smov [#allocation12]   ;;  %s3838_s14 = scalar_lea.vmem %s345_s15, 48 }
  0x1c   : > { %p3523_p4 = pneg %p4318_p3  ;;  %s4332_s20 = sshll.u32 %s4179_s19, 4  ;;  %s400_s20 = int_to_ptr.vmem [resolvable:$true] %s4332_s20 }
  0x1d   : > { %p3839_p7 = scmp.ne.s32.totalorder %s345_s15, %s3838_s14  ;;  %s3845_s12 = scalar_lea.vmem %s345_s15, 64 }
  0x1e   : > { %p4326_p5 = pnand %p3523_p4, %p4313_p1  ;;  %p3846_p10 = scmp.lt.s32.totalorder %s345_s15, %s345_s15 }
  0x1f   : > { %p3847_p11 = scmp.lt.s32.totalorder %s3845_s12, %s3838_s14 }
  0x20   : > { %p4336_p6 = pneg %p4326_p5 }
  0x21   : > { %p3848_p12 = por %p3847_p11, %p3846_p10 }
  0x22   : > { %p3841_p8 = pnand %p3839_p7, %p4336_p6 }
  0x24   : > { %p3842_p9 = pneg %p3841_p8 }
  0x26   : > { %p3849_p13 = pnand %p3848_p12, %p3842_p9 }
  0x28   : > { %3852 = shalt.err (!%p3849_p13)
}
  0x29   : > { %s4903_s17 = smov 16   ;;  %s4901_s19 = smov 1  }
  0x2a   : > { %s4924_s1 = sld [smem:[#allocation27_spill]]  ;;  %s3864_s12 = scalar_lea.vmem %s4330_s18, 48 }
  0x2b   : > { %p3865_p0 = scmp.ne.s32.totalorder %s4330_s18, %s3864_s12  ;;  %s3871_s14 = scalar_lea.vmem %s4330_s18, 64 }
  0x2c   : > { %p3872_p7 = scmp.lt.s32.totalorder %s4330_s18, %s4330_s18  ;;  %p3873_p8 = scmp.lt.s32.totalorder %s3871_s14, %s3864_s12 }
  0x2d   : > { %p3867_p2 = pnand %p3865_p0, %p4336_p6 }
  0x2e   : > { %p3874_p9 = por %p3873_p8, %p3872_p7 }
  0x2f   : > { %p3868_p4 = pneg %p3867_p2 }
  0x30   : > { %3526 = dma.hbm_to_vmem [thread:$0]  (!%p4326_p5), %s4924_s1, 48, %s345_s15, [#allocation7], %s4903_s17, %s4903_s17, %s4901_s19  }
  0x31   : > { %p3875_p10 = pnand %p3874_p9, %p3868_p4 }
  0x33   : > { %3878 = shalt.err (!%p3875_p10)
}
  0x34   : > { %s4925_s4 = sld [smem:[#allocation29_spill]]  ;;  %s3890_s15 = scalar_lea.vmem %s400_s20, 3072 }
  0x35   : > { %p3891_p11 = scmp.ne.s32.totalorder %s400_s20, %s3890_s15  ;;  %p3898_p0 = scmp.lt.s32.totalorder %s400_s20, %s400_s20 }
  0x36   : > { %p3899_p2 = scmp.lt.s32.totalorder %s3890_s15, %s3890_s15 }
  0x37   : > { %p3893_p12 = pnand %p3891_p11, %p4336_p6 }
  0x38   : > { %p3900_p4 = por %p3899_p2, %p3898_p0 }
  0x39   : > { %p3894_p13 = pneg %p3893_p12 }
  0x3a   : > { %3532 = dma.hbm_to_vmem [thread:$0]  (!%p4326_p5), %s4925_s4, 48, %s4330_s18, [#allocation10], %s4903_s17, %s4903_s17, %s4901_s19  }
  0x3b   : > { %p3901_p7 = pnand %p3900_p4, %p3894_p13 }
  0x3d   : > { %3904 = shalt.err (!%p3901_p7)
}
  0x3e   : > { %s4905_s12 = smov 64   ;;  %s4906_s14 = smov 4  }
  0x3f   : > { %s4926_s6 = sld [smem:[#allocation31_spill]]  ;;  %s4184_s25 = smov [#allocation15]  }
  0x40   : > { %s425_s19 = sshll.u32 %s4184_s25, 4  ;;  %s426_s19 = int_to_ptr.vmem [resolvable:$true] %s425_s19 }
  0x41   : > { %s3916_s17 = scalar_lea.vmem %s426_s19, 12288  ;;  %p3924_p11 = scmp.lt.s32.totalorder %s426_s19, %s426_s19 }
  0x42   : > { %p3917_p8 = scmp.ne.s32.totalorder %s426_s19, %s3916_s17  ;;  %p3925_p12 = scmp.lt.s32.totalorder %s3916_s17, %s3916_s17 }
  0x44   : > { %p3919_p9 = pnand %p3917_p8, %p4336_p6  ;;  %p3926_p13 = por %p3925_p12, %p3924_p11 }
  0x45   : > { %3538 = dma.hbm_to_vmem [thread:$0]  (!%p4326_p5), %s4926_s6, 3072, %s400_s20, [#allocation13], %s4905_s12, %s4905_s12, %s4906_s14  }
  0x46   : > { %p3920_p10 = pneg %p3919_p9 }
  0x48   : > { %p3927_p0 = pnand %p3926_p13, %p3920_p10 }
  0x4a   : > { %3930 = shalt.err (!%p3927_p0)
}
  0x4b   : > { %s4185_s15 = smov 256   ;;  %s4927_s1 = smov 16  }
  0x4c   : > { %s4928_s8 = sld [smem:[#allocation33_spill]]  ;;  %s4186_s20 = smov [#allocation8]  }
  0x4d   : > { %s360_s11 = sshll.u32 %s4186_s20, 4  ;;  %s4187_s25 = smov [#allocation11]   ;;  %s361_s11 = int_to_ptr.vmem [resolvable:$true] %s360_s11 }
  0x4e   : > { %s386_s12 = sshll.u32 %s4187_s25, 4  ;;  %s3942_s14 = scalar_lea.vmem %s361_s11, 48  ;;  %s387_s12 = int_to_ptr.vmem [resolvable:$true] %s386_s12 }
  0x4f   : > { %p3943_p2 = scmp.ne.s32.totalorder %s361_s11, %s3942_s14  ;;  %s3949_s17 = scalar_lea.vmem %s361_s11, 64 }
  0x50   : > { %p3950_p8 = scmp.lt.s32.totalorder %s361_s11, %s361_s11  ;;  %p3951_p9 = scmp.lt.s32.totalorder %s3949_s17, %s3942_s14 }
  0x51   : > { %p3945_p4 = pnand %p3943_p2, %p4336_p6 }
  0x52   : > { %3544 = dma.hbm_to_vmem [thread:$0]  (!%p4326_p5), %s4928_s8, 12288, %s426_s19, [#allocation16], %s4185_s15, %s4185_s15, %s4927_s1  }
  0x53   : > { %p3946_p7 = pneg %p3945_p4  ;;  %p3952_p10 = por %p3951_p9, %p3950_p8 }
  0x55   : > { %p3953_p11 = pnand %p3952_p10, %p3946_p7 }
  0x57   : > { %3956 = shalt.err (!%p3953_p11)
}
  0x58   : > { %s4929_s4 = smov 1   ;;  %s4930_s3 = sld [smem:[#allocation28_spill]] }
  0x59   : > { %s3968_s18 = scalar_lea.vmem %s387_s12, 9216  ;;  %p3976_p2 = scmp.lt.s32.totalorder %s387_s12, %s387_s12 }
  0x5a   : > { %p3969_p12 = scmp.ne.s32.totalorder %s387_s12, %s3968_s18  ;;  %p3977_p4 = scmp.lt.s32.totalorder %s3968_s18, %s3968_s18 }
  0x5c   : > { %p3971_p13 = pnand %p3969_p12, %p4336_p6  ;;  %p3978_p7 = por %p3977_p4, %p3976_p2 }
  0x5e   : > { %3529 = dma.hbm_to_vmem [thread:$0]  (!%p4326_p5), %s4930_s3, 48, %s361_s11, [#allocation7], %s4927_s1, %s4927_s1, %s4929_s4  }
  0x5f   : > { %p3972_p0 = pneg %p3971_p13 }
  0x61   : > { %p3979_p8 = pnand %p3978_p7, %p3972_p0 }
  0x63   : > { %3982 = shalt.err (!%p3979_p8)
}
  0x64   : > { %s4188_s14 = smov 192   ;;  %s4189_s20 = smov 12  }
  0x65   : > { %s4931_s5 = sld [smem:[#allocation30_spill]]  ;;  %s4190_s11 = smov [#allocation14]  }
  0x66   : > { %s412_s19 = sshll.u32 %s4190_s11, 4  ;;  %s4191_s15 = smov [#allocation17]   ;;  %s413_s19 = int_to_ptr.vmem [resolvable:$true] %s412_s19 }
  0x67   : > { %s441_s3 = sshll.u32 %s4191_s15, 4  ;;  %s3994_s6 = scalar_lea.vmem %s413_s19, 48  ;;  %s442_s3 = int_to_ptr.vmem [resolvable:$true] %s441_s3 }
  0x68   : > { %p3995_p9 = scmp.ne.s32.totalorder %s413_s19, %s3994_s6  ;;  %s4001_s18 = scalar_lea.vmem %s413_s19, 64 }
  0x69   : > { %p4002_p12 = scmp.lt.s32.totalorder %s413_s19, %s413_s19  ;;  %p4003_p13 = scmp.lt.s32.totalorder %s4001_s18, %s3994_s6 }
  0x6a   : > { %p3997_p10 = pnand %p3995_p9, %p4336_p6 }
  0x6b   : > { %3535 = dma.hbm_to_vmem [thread:$0]  (!%p4326_p5), %s4931_s5, 9216, %s387_s12, [#allocation10], %s4188_s14, %s4188_s14, %s4189_s20  }
  0x6c   : > { %p3998_p11 = pneg %p3997_p10  ;;  %p4004_p0 = por %p4003_p13, %p4002_p12 }
  0x6e   : > { %p4005_p2 = pnand %p4004_p0, %p3998_p11 }
  0x70   : > { %4008 = shalt.err (!%p4005_p2)
}
  0x71   : > { %s4932_s7 = sld [smem:[#allocation32_spill]]  ;;  %s4020_s20 = scalar_lea.vmem %s442_s3, 12288 }
  0x72   : > { %p4021_p4 = scmp.ne.s32.totalorder %s442_s3, %s4020_s20  ;;  %p4028_p9 = scmp.lt.s32.totalorder %s442_s3, %s442_s3 }
  0x73   : > { %p4029_p10 = scmp.lt.s32.totalorder %s4020_s20, %s4020_s20 }
  0x74   : > { %p4023_p7 = pnand %p4021_p4, %p4336_p6 }
  0x75   : > { %p4030_p11 = por %p4029_p10, %p4028_p9 }
  0x76   : > { %p4024_p8 = pneg %p4023_p7 }
  0x77   : > { %3541 = dma.hbm_to_vmem [thread:$0]  (!%p4326_p5), %s4932_s7, 48, %s413_s19, [#allocation13], %s4927_s1, %s4927_s1, %s4929_s4  }
  0x78   : > { %p4031_p12 = pnand %p4030_p11, %p4024_p8 }
  0x7a   : > { %4034 = shalt.err (!%p4031_p12)
}
  0x7b   : > { %s4933_s6 = smov 4   ;;  %s4934_s25 = smov 64  }
  0x7c   : > { %s4935_s10 = sld [smem:[#allocation34_spill]]  ;;  %s3055_s1 = sadd.s32 4294967294, %s4175_s28  }
  0x7d   : > { %s41_s29 = sadd.s32 1, %s4167_s26  ;;  %s44_s16 = sadd.s32 1, %s4171_s27 }
  0x7e   : > { %p42_p6 = scmp.ge.s32.totalorder %s41_s29, 3  ;;  %s51_s4 = sadd.s32 1, %s4155_s23 }
  0x7f   : > { %p58_p13 = scmp.ne.s32.totalorder %s4155_s23, %s4151_s22  ;;  %p59_p0 = scmp.eq.s32.totalorder %s4175_s28, 0 }
  0x80   : > { %s4957_s29 = smov (%p42_p6, %s41_s29), 0  ;;  %s4959_s16 = smov (!%p42_p6, %s44_s16), %s4171_s27 }
  0x81   : > { %p4432_p2 = por %p59_p0, %p58_p13  ;;  %p46_p4 = scmp.ge.s32.totalorder %s4959_s16, 2 }
  0x82   : > { %3547 = dma.hbm_to_vmem [thread:$0]  (!%p4326_p5), %s4935_s10, 12288, %s442_s3, [#allocation16], %s4934_s25, %s4934_s25, %s4933_s6  }
  0x83   : > { %p64_p5 = scmp.ne.s32.totalorder %s4151_s22, %s4147_s21  ;;  %s4937_s3 = sadd.s32 4294967295, %s4175_s28  }
  0x84   : > { %p319_p7 = scmp.eq.s32.totalorder %s4937_s3, 5  ;;  %p325_p9 = scmp.eq.s32.totalorder %s3055_s1, 5 }
  0x85   : > { %p4442_p8 = por %p4313_p1, %p64_p5  ;;  %s4961_s16 = smov (%p46_p4, %s4959_s16), 0 }
  0x86   : > { %4939 = sst [smem:[#allocation26_spill]] %s4961_s16  ;;  %p4448_p10 = por %p319_p7, %p58_p13 }
  0x87   : > { %p4452_p11 = por %p325_p9, %p64_p5  ;;  %s48_s14 = ssub.s32 %s4171_s27, %s4961_s16 }
  0x88   : > { %s4940_s18 = scalar_select %p4448_p10, 1, 0 }
  0x89   : > { %s4941_s12 = scalar_select %p4452_p11, 1, 0 }
  0x8a   : > { %p3564_p12 = scmp.lt.s32.totalorder %s4175_s28, 6  ;;  %p49_p6 = scmp.eq.s32.totalorder %s48_s14, 0 }
  0x8b   : > { %s458_s20 = sand.u32 1, %s4155_s23   ;;  %s3067_s17 = sshll.u32 %s4171_s27, 7 }
  0x8c   : > { %s3066_s6 = sshll.u32 %s458_s20, 3  ;;  %s467_s3 = scalar_lea.hbm %s4886_s0, %s3067_s17 }
  0x8d   : > { %s4461_s25 = scalar_select %p49_p6, %s4155_s23, %s51_s4  }
  0x8e   : > { %s462_s5 = scalar_lea.vmem [#allocation3], %s3066_s6  ;;  %p4469_p13 = pnand %p3564_p12, %p4432_p2 }
  0x8f   : > { %s469_s7 = sshll.u32 %s462_s5, 4  ;;  %s459_s10 = scalar_lea.sflag [#allocation4], %s458_s20  ;;  %s470_s7 = int_to_ptr.vmem [resolvable:$true] %s469_s7 }
  0x90   : > { %p4037_p0 = pneg %p4469_p13  ;;  %s4048_s14 = scalar_lea.vmem %s470_s7, 128 }
  0x91   : > { %p4049_p5 = scmp.ne.s32.totalorder %s470_s7, %s4048_s14  ;;  %s4192_s4 = smov [#allocation3]  }
  0x92   : > { %s4053_s16 = sshll.u32 %s4192_s4, 4  ;;  %s4054_s16 = int_to_ptr.vmem [resolvable:$false] %s4053_s16 }
  0x93   : > { %p4051_p4 = pnand %p4049_p5, %p4037_p0  ;;  %s4055_s17 = scalar_lea.vmem %s4054_s16, 256 }
  0x94   : > { %p4056_p9 = scmp.lt.s32.totalorder %s470_s7, %s4054_s16  ;;  %p4057_p6 = scmp.lt.s32.totalorder %s4055_s17, %s4048_s14 }
  0x95   : > { %p4052_p7 = pneg %p4051_p4 }
  0x96   : > { %p4058_p11 = por %p4057_p6, %p4056_p9 }
  0x98   : > { %p4059_p10 = pnand %p4058_p11, %p4052_p7 }
  0x9a   : > { %4062 = shalt.err (!%p4059_p10)
}
  0x9b   : > { %3551 = dma.hbm_to_vmem [thread:$0]  (!%p4469_p13), %s467_s3, 128, %s470_s7, %s459_s10  }
  0x9c   : > { %478 = sbr.rel (%p4318_p3) target bundleno = 5759 (0x167f), region = 68  ;;  %s4480_s5 = sand.u32 (!%p4318_p3), 1, %s4151_s22  }
  0x9d   : > { %s3069_s19 = sshll.u32 (!%p4318_p3), %s4480_s5, 3  ;;  %s481_s20 = scalar_lea.sflag (!%p4318_p3), [#allocation4], %s4480_s5 }
  0x9e   : > { %s484_s6 = scalar_lea.vmem (!%p4318_p3), [#allocation3], %s3069_s19 }
  0xa1   : > { %4122 = dma.done.wait (%p4442_p8), %s481_s20, 128  }
  0xa2   : > { %4124 = vsyncadd (%p4442_p8), %s481_s20, 4294967168 }
  0xa3   : > { %4126 = dma.done.wait (%p4313_p1), [#allocation7], 96  }
  0xa4   : > { %4128 = vsyncadd (%p4313_p1), [#allocation7], 4294967200 }
  0xa5   : > { %4130 = dma.done.wait (%p4313_p1), [#allocation10], 9264  }
  0xa6   : > { %4132 = vsyncadd (%p4313_p1), [#allocation10], 4294958032 }
  0xa7   : > { %4134 = dma.done.wait (%p4313_p1), [#allocation13], 3120  }
  0xa8   : > { %4136 = vsyncadd (%p4313_p1), [#allocation13], 4294964176 }
  0xa9   : > { %4138 = dma.done.wait (%p4313_p1), [#allocation16], 24576  }
  0xaa   : > { %4140 = vsyncadd (%p4313_p1), [#allocation16], 4294942720  ;;  %s4504_s7 = scalar_lea.vmem [#allocation18], %s3069_s19  ;;  %p3079_p3 = scmp.ne.s32.totalorder %s4159_s24, 0 }
  0xac   : > { %561 = sbr.rel (%p3079_p3) target bundleno = 179 (0xb3), region = 108 }
  0xb1   : > { %v562_v0 = vld [vmem:[%s484_s6] sm:$0xff] }
  0xb2   : > { %563 = vst [vmem:[#allocation2] sm:$0xff] %v562_v0 }
  0xb3 PF: > { %s3218_s8 = smul.u32 192, %s4159_s24  ;;  %v4193_v2 = vmov 0.0   ;;  %v4194_v23 = vmov 0   ;;  %vm4195_vm0 = vmmov 0   ;;  %s567_s16 = scalar_lea.vmem %s4888_s2, %s4159_s24  ;;  %vm926_vm1 = vcmask 1043456  }
  0xb4   : > { %3323 = vmatprep.subr.bf16.mxu1 %v4193_v2  ;;  %791 = vmatprep.mubr.bf16.mxu0 %v4194_v23  ;;  %s565_s15 = scalar_lea.vmem [#allocation6], %s4159_s24  ;;  %v3081_v38 = vld [vmem:[%s567_s16] ss:$0 sm:$0xff]  ;;  %vm863_vm2 = vcmask 130048   ;;  %s4196_s11 = smov 112   ;;  %vm910_vm3 = vcmask 64512  }
  0xb5   : > { %s4509_s10 = scalar_lea.vmem [#allocation11], %s3218_s8  ;;  %3339 = vmatprep.mubr.msk.bf16.mxu1 %vm4195_vm0, %v4193_v2  ;;  %v3080_v36 = vld [vmem:[%s565_s15] ss:$0 sm:$0xff]  ;;  %s4197_s1 = smov 96  }
  0xb6   : > { %v3663_v3 = vld [vmem:[%s4509_s10 + $0xac] ss:$12 sps:$4 sm:$0xff]   ;;  %v3665_v4 = vld [vmem:[%s4509_s10 + $0xa8] ss:$12 sps:$4 sm:$0xff]   ;;  %v3666_v5 = vld [vmem:[%s4509_s10 + $0xb0] ss:$12 sps:$4 sm:$0xff]  }
  0xb7   : > { %759 = vmatprep.subr.bf16.mxu0 %v3663_v3  ;;  %v3667_v6 = vld [vmem:[%s4509_s10 + $0x94] ss:$12 sps:$4 sm:$0xff]   ;;  %v3669_v7 = vld [vmem:[%s4509_s10 + $0x90] ss:$12 sps:$4 sm:$0xff]   ;;  %3324 = vmatpush3.bf16.msra.mxu1 %v3666_v5  ;;  %v3670_v8 = vld [vmem:[%s4509_s10 + $0x98] ss:$12 sps:$4 sm:$0xff]  }
  0xb8   : > { %760 = vmatpush1.bf16.msra.mxu0 %v3665_v4  ;;  %3325 = vmatprep.subr.bf16.mxu1 %v4193_v2  ;;  %v3671_v13 = vld [vmem:[%s4509_s10 + $0x7c] ss:$12 sps:$4 sm:$0xff]   ;;  %v3673_v14 = vld [vmem:[%s4509_s10 + $0x78] ss:$12 sps:$4 sm:$0xff]   ;;  %v3674_v15 = vld [vmem:[%s4509_s10 + $0x80] ss:$12 sps:$4 sm:$0xff]  }
  0xb9   : > { %v564_v1 = vld [vmem:[#allocation2] sm:$0xff]  ;;  %761 = vmatprep.subr.bf16.mxu0 %v3667_v6  ;;  %v3678_v18 = vld [vmem:[%s4509_s10 + $0x68] ss:$12 sps:$4 sm:$0xff]   ;;  %v3679_v19 = vld [vmem:[%s4509_s10 + $0x4c] ss:$12 sps:$4 sm:$0xff]   ;;  %s3219_s3 = sshll.u32 %s4159_s24, 6 }
  0xba   : > { %569 = vadd.xlane.f32.xlu0 %v564_v1  ;;  %v3675_v16 = vld [vmem:[%s4509_s10 + $0x64] ss:$12 sps:$4 sm:$0xff]   ;;  %v3677_v17 = vld [vmem:[%s4509_s10 + $0x60] ss:$12 sps:$4 sm:$0xff]   ;;  %v3681_v20 = vld [vmem:[%s4509_s10 + $0x48] ss:$12 sps:$4 sm:$0xff]  }
  0xbb   : > { %3326 = vmatpush3.bf16.msra.mxu1 %v3670_v8  ;;  %v3682_v21 = vld [vmem:[%s4509_s10 + $0x50] ss:$12 sps:$4 sm:$0xff]   ;;  %v3683_v22 = vld [vmem:[%s4509_s10 + $0x34] ss:$12 sps:$4 sm:$0xff]   ;;  %v3686_v25 = vld [vmem:[%s4509_s10 + $0x38] ss:$12 sps:$4 sm:$0xff]  }
  0xbc   : > { %762 = vmatpush1.bf16.msra.mxu0 %v3669_v7  ;;  %3327 = vmatprep.subr.bf16.mxu1 %v4193_v2  ;;  %v3685_v24 = vld [vmem:[%s4509_s10 + $0x30] ss:$12 sps:$4 sm:$0xff]   ;;  %v3689_v27 = vld [vmem:[%s4509_s10 + $0x18] ss:$12 sps:$4 sm:$0xff]   ;;  %v3690_v28 = vld [vmem:[%s4509_s10 + $0x20] ss:$12 sps:$4 sm:$0xff]  }
  0xbd   : > { %763 = vmatprep.subr.bf16.mxu0 %v3671_v13  ;;  %v3687_v26 = vld [vmem:[%s4509_s10 + $0x1c] ss:$12 sps:$4 sm:$0xff]   ;;  %v3691_v29 = vld [vmem:[%s4509_s10 + $0x4] ss:$12 sps:$4 sm:$0xff]   ;;  %v3693_v30 = vld [vmem:[%s4509_s10] ss:$12 sps:$4 sm:$0xff]  }
  0xbe   : > { %v3694_v31 = vld [vmem:[%s4509_s10 + $0x8] ss:$12 sps:$4 sm:$0xff]   ;;  %s4599_s14 = scalar_lea.vmem [#allocation12], %s3219_s3  ;;  %s4198_s4 = smov 80  }
  0xbf   : > { %3328 = vmatpush3.bf16.msra.mxu1 %v3674_v15  ;;  %s4199_s17 = smov 64   ;;  %s4200_s19 = smov 48  }
  0xc0   : > { %764 = vmatpush1.bf16.msra.mxu0 %v3673_v14  ;;  %3329 = vmatprep.subr.bf16.mxu1 %v4193_v2  ;;  %s4201_s20 = smov 32   ;;  %s4202_s6 = smov 16  }
  0xc1   : > { %765 = vmatprep.subr.bf16.mxu0 %v3675_v16  ;;  %s2149_s8 = scalar_lea.vmem [#allocation14], %s4159_s24  ;;  %s3220_s10 = sshll.u32 %s4159_s24, 8 }
  0xc2   : > { %s4758_s30 = scalar_lea.vmem [#allocation15], %s3220_s10  ;;  %s4768_s13 = scalar_lea.vmem [#allocation17], %s3220_s10 }
  0xc3   : > { %3330 = vmatpush3.bf16.msra.mxu1 %v3678_v18  ;;  %s2159_s16 = scalar_lea.vmem [#allocation8], %s4159_s24  ;;  %s2161_s15 = scalar_lea.vmem [#allocation9], %s4159_s24 }
  0xc4   : > { %766 = vmatpush1.bf16.msra.mxu0 %v3677_v17  ;;  %3331 = vmatprep.subr.bf16.mxu1 %v4193_v2  ;;  %p3213_p1 = scmp.ne.s32.totalorder %s4159_s24, 2 }
  0xc5   : > { %767 = vmatprep.subr.bf16.mxu0 %v3679_v19 }
  0xc7   : > { %3332 = vmatpush3.bf16.msra.mxu1 %v3682_v21 }
  0xc8   : > { %768 = vmatpush1.bf16.msra.mxu0 %v3681_v20  ;;  %3333 = vmatprep.subr.bf16.mxu1 %v4193_v2  ;;  %v3696_v20 = vld [vmem:[%s4599_s14 + $0x8] sm:$0xff]  }
  0xc9   : > { %769 = vmatprep.subr.bf16.mxu0 %v3683_v22 }
  0xcb   : > { %3334 = vmatpush3.bf16.msra.mxu1 %v3686_v25 }
  0xcc   : > { %770 = vmatpush1.bf16.msra.mxu0 %v3685_v24  ;;  %3335 = vmatprep.subr.bf16.mxu1 %v4193_v2 }
  0xcd   : > { %771 = vmatprep.subr.bf16.mxu0 %v3687_v26 }
  0xcf   : > { %3336 = vmatpush3.bf16.msra.mxu1 %v3690_v28 }
  0xd0   : > { %772 = vmatpush1.bf16.msra.mxu0 %v3689_v27  ;;  %3337 = vmatprep.subr.bf16.mxu1 %v4193_v2  ;;  %v3695_v27 = vld [vmem:[%s4599_s14] sm:$0xff]  }
  0xd1   : > { %773 = vmatprep.subr.bf16.mxu0 %v3691_v29 }
  0xd3   : > { %3338 = vmatpush3.bf16.msra.mxu1 %v3694_v31 }
  0xd4   : > { %774 = vmatpush1.bf16.msra.mxu0 %v3693_v30  ;;  %3349 = vmatprep.subr.bf16.mxu1 %v4193_v2 }
  0xd5   : > { %3343 = vmatprep.subr.bf16.mxu0 %v4193_v2 }
 0x143   : > { %v570_v9 = vpop.xlane.xlu0 %569 }
 0x144   : > { %v572_v10 = vmul.f32 0.0078125, %v570_v9 }
 0x146   : > { %v573_v11 = vsub.f32 %v564_v1, %v572_v10 }
 0x148   : > { %v574_v12 = vmul.f32 %v573_v11, %v573_v11 }
 0x14a   : > { %575 = vadd.xlane.f32.xlu0 %v574_v12 }
 0x1d3   : > { %v576_v32 = vpop.xlane.xlu0 %575 }
 0x1d4   : > { %v577_v33 = vmul.f32 0.0078125, %v576_v32 }
 0x1d6   : > { %v578_v34 = vadd.f32 1e-05, %v577_v33 }
 0x1d8   : > { %3783 = vrsqrt.f32 %v578_v34 }
 0x1e5   : > { %v3784_v35 = vpop.eup %3783 }
 0x1e6   : > { %v580_v37 = vmul.f32 %v3784_v35, %v573_v11 }
 0x1e8   : > { %v587_v39 = vmul.f32 %v3080_v36, %v580_v37 }
 0x1ea   : > { %v4552_v40 = vadd.f32 %v3081_v38, %v587_v39 }
 0x1ec   : > { %v595_v41 = vpack.c.bf16 %v4552_v40, %v4552_v40 }
 0x1ee   : > { %792 = vmatmul.mubr.bf16.vlgmr.msra.gmra.mxu0 %v595_v41  ;;  %3340 = vmatmul.mubr.bf16.vlgmr.msra.gmra.mxu1 %v595_v41 }
 0x1ef   : > { %3345 = vmatprep.mubr.msk.bf16.mxu0 %vm4195_vm0, %v4193_v2  ;;  %3351 = vmatprep.mubr.msk.bf16.mxu1 %vm4195_vm0, %v4193_v2 }
 0x2ae   : > { %v793_v42 = vpop.f32.mrf.mxu0  ;;  %v834_v43 = vpop.f32.mrf.mxu1 }
 0x2af   : > { %v4560_v44 = vpack.c.bf16 %v834_v43, %v834_v43  ;;  %v840_v47 = vmul.f32 4.0, %v793_v42 }
 0x2b0   : > { %v795_v45 = vpop.f32.mrf.mxu0  ;;  %v3341_v46 = vpop.f32.mrf.mxu1 }
 0x2b1   : > { %v4562_v48 = vpack.c.bf16 %v795_v45, %v795_v45  ;;  %v928_v49 = vsel %vm926_vm1, %v4560_v44, 0  ;;  %v4571_v55 = vpack.c.bf16 %v840_v47, %v840_v47 }
 0x2b2   : > { %v797_v50 = vpop.f32.mrf.mxu0  ;;  %v837_v51 = vpop.f32.mrf.mxu1  ;;  %3350 = vmatpush3.bf16.msra.mxu1 %v928_v49 }
 0x2b3   : > { %975 = vrot.lane.b32.xlu1 %v4562_v48, %s4196_s11  ;;  %v868_v52 = vsel %vm863_vm2, %v4562_v48, 0  ;;  %3361 = vmatprep.subr.bf16.mxu1 %v4193_v2 }
 0x2b4   : > { %v798_v53 = vpop.f32.mrf.mxu0  ;;  %v3342_v54 = vpop.f32.mrf.mxu1  ;;  %3344 = vmatpush3.bf16.xpose.msra.mxu0 %v868_v52 }
 0x2b5   : > { %3355 = vmatprep.subr.bf16.mxu0 %v4193_v2 }
 0x2b7   : > { %972 = vrot.lane.b32.xlu1 %v4571_v55, %s4196_s11 }
 0x2bb   : > { %3346 = vmatmul.mubr.msk.bf16.vlgmr.msra.gmra.mxu0 %vm863_vm2, %v4571_v55 }
 0x2bc   : > { %3357 = vmatprep.mubr.msk.bf16.mxu0 %vm4195_vm0, %v4193_v2 }
 0x325   : > { %v976_v56 = vpop.permute.xlu1 %975 }
 0x326   : > { %v981_v57 = vsel %vm863_vm2, %v976_v56, 0 }
 0x327   : > { %3356 = vmatpush3.bf16.xpose.msra.mxu0 %v981_v57 }
 0x328   : > { %3367 = vmatprep.subr.bf16.mxu0 %v4193_v2 }
 0x329   : > { %v973_v58 = vpop.permute.xlu1 %972 }
 0x32e   : > { %3358 = vmatmul.mubr.msk.bf16.vlgmr.msra.gmra.mxu0 %vm863_vm2, %v973_v58 }
 0x32f   : > { %3369 = vmatprep.mubr.msk.bf16.mxu0 %vm4195_vm0, %v4193_v2  ;;  %3368 = vmatpush3.bf16.msra.mxu0 %v3696_v20 }
 0x330   : > { %3379 = vmatprep.subr.bf16.mxu0 %v4193_v2 }
 0x37b   : > { %v904_v59 = vpop.f32.mrf.mxu0 }
 0x37c   : > { %v911_v60 = vsel %vm910_vm3, %v904_v59, -inf }
 0x37d   : > { %912 = vmax.xlane.f32.xlu0 %v911_v60  ;;  %v3347_v61 = vpop.f32.mrf.mxu0 }
 0x37f   : > { %v907_v62 = vpop.f32.mrf.mxu0 }
 0x381   : > { %v3348_v63 = vpop.f32.mrf.mxu0 }
 0x3ee   : > { %v1017_v0 = vpop.f32.mrf.mxu0 }
 0x3ef   : > { %v1023_v1 = vsel %vm910_vm3, %v1017_v0, -inf }
 0x3f0   : > { %1024 = vmax.xlane.f32.xlu1 %v1023_v1  ;;  %v3359_v3 = vpop.f32.mrf.mxu0 }
 0x3f2   : > { %v1020_v4 = vpop.f32.mrf.mxu0 }
 0x3f4   : > { %v3360_v5 = vpop.f32.mrf.mxu0 }
 0x401   : > { %1183 = vrot.lane.b32.xlu1 %v4571_v55, %s4197_s1 }
 0x406   : > { %v913_v6 = vpop.xlane.xlu0 %912 }
 0x407   : > { %v914_v7 = vsub.f32 %v904_v59, %v913_v6 }
 0x409   : > { %v915_v8 = vmul.f32 1.442695, %v914_v7 }
 0x40b   : > { %3785 = vpow2.f32 %v915_v8 }
 0x418   : > { %v3786_v9 = vpop.eup %3785 }
 0x419   : > { %v917_v10 = vsel %vm910_vm3, %v3786_v9, 0.0 }
 0x41a   : > { %918 = vadd.xlane.f32.xlu0 %v917_v10  ;;  %v3697_v10 = vld [vmem:[%s4599_s14 + $0x10] sm:$0xff]  }
 0x479   : > { %v1025_v11 = vpop.xlane.xlu1 %1024 }
 0x47a   : > { %v1026_v12 = vsub.f32 %v1017_v0, %v1025_v11 }
 0x47c   : > { %v1027_v13 = vmul.f32 1.442695, %v1026_v12 }
 0x47d   : > { %v1184_v42 = vpop.permute.xlu1 %1183 }
 0x47e   : > { %3787 = vpow2.f32 %v1027_v13 }
 0x48b   : > { %v3788_v14 = vpop.eup %3787 }
 0x48c   : > { %v1029_v15 = vsel %vm910_vm3, %v3788_v14, 0.0 }
 0x48d   : > { %1030 = vadd.xlane.f32.xlu0 %v1029_v15 }
 0x4a3   : > { %v919_v16 = vpop.xlane.xlu0 %918  ;;  %1036 = vrot.lane.b32.xlu0 %v4560_v44, %s4196_s11  ;;  %s3146_s11 = sshll.u32 %s4159_s24, 2 }
 0x4a4   : > { %3789 = vrcp.f32 %v919_v16 }
 0x4a7   : > { %1185 = vrot.lane.b32.xlu0 %v4562_v48, %s4197_s1 }
 0x4b1   : > { %v3790_v17 = vpop.eup %3789 }
 0x4b2   : > { %v921_v18 = vmul.f32 %v3790_v17, %v3786_v9 }
 0x4b4   : > { %v922_v19 = vpack.c.bf16 %v921_v18, %v921_v18 }
 0x4b6   : > { %3352 = vmatmul.mubr.msk.bf16.vlgmr.msra.gmra.mxu1 %vm910_vm3, %v922_v19 }
 0x4b7   : > { %3363 = vmatprep.mubr.msk.bf16.mxu1 %vm4195_vm0, %v4193_v2 }
 0x516   : > { %v1031_v21 = vpop.xlane.xlu0 %1030 }
 0x517   : > { %3791 = vrcp.f32 %v1031_v21 }
 0x51a   : > { %v1037_v22 = vpop.permute.xlu0 %1036 }
 0x51b   : > { %v1042_v24 = vsel %vm926_vm1, %v1037_v22, 0 }
 0x51c   : > { %3362 = vmatpush3.bf16.msra.mxu1 %v1042_v24 }
 0x51d   : > { %3373 = vmatprep.subr.bf16.mxu1 %v4193_v2 }
 0x51e   : > { %v1186_v34 = vpop.permute.xlu0 %1185 }
 0x51f   : > { %v1191_v38 = vsel %vm863_vm2, %v1186_v34, 0 }
 0x524   : > { %v3792_v25 = vpop.eup %3791 }
 0x525   : > { %v1033_v26 = vmul.f32 %v3792_v25, %v3788_v14 }
 0x527   : > { %v1034_v28 = vpack.c.bf16 %v1033_v26, %v1033_v26 }
 0x529   : > { %3364 = vmatmul.mubr.msk.bf16.vlgmr.msra.gmra.mxu1 %vm910_vm3, %v1034_v28 }
 0x52a   : > { %3374 = vmatpush3.bf16.msra.mxu1 %v3695_v27  ;;  %3375 = vmatprep.mubr.msk.bf16.mxu1 %vm4195_vm0, %v4193_v2 }
 0x52b   : > { %3385 = vmatprep.subr.bf16.mxu1 %v4193_v2 }
 0x576   : > { %v964_v29 = vpop.f32.mrf.mxu1 }
 0x577   : > { %v970_v30 = vpack.c.bf16 %v964_v29, %v964_v29 }
 0x578   : > { %v3353_v31 = vpop.f32.mrf.mxu1 }
 0x579   : > { %3376 = vmatmul.mubr.msk.bf16.vlgmr.msra.gmra.mxu1 %vm863_vm2, %v970_v30 }
 0x57a   : > { %v967_v32 = vpop.f32.mrf.mxu1  ;;  %3387 = vmatprep.mubr.msk.bf16.mxu1 %vm4195_vm0, %v4193_v2 }
 0x57c   : > { %v3354_v33 = vpop.f32.mrf.mxu1 }
 0x5e9   : > { %v1078_v35 = vpop.f32.mrf.mxu1 }
 0x5ea   : > { %v1084_v36 = vpack.c.bf16 %v1078_v35, %v1078_v35 }
 0x5eb   : > { %v3365_v37 = vpop.f32.mrf.mxu1 }
 0x5ec   : > { %3370 = vmatmul.mubr.msk.bf16.vlgmr.msra.gmra.mxu0 %vm863_vm2, %v1084_v36 }
 0x5ed   : > { %3380 = vmatpush3.bf16.xpose.msra.mxu0 %v1191_v38  ;;  %v1081_v39 = vpop.f32.mrf.mxu1  ;;  %3381 = vmatprep.mubr.msk.bf16.mxu0 %vm4195_vm0, %v4193_v2 }
 0x5ee   : > { %3391 = vmatprep.subr.bf16.mxu0 %v4193_v2 }
 0x5ef   : > { %v3366_v41 = vpop.f32.mrf.mxu1 }
 0x5f4   : > { %3382 = vmatmul.mubr.msk.bf16.vlgmr.msra.gmra.mxu0 %vm863_vm2, %v1184_v42 }
 0x5f5   : > { %3393 = vmatprep.mubr.msk.bf16.mxu0 %vm4195_vm0, %v4193_v2  ;;  %3392 = vmatpush3.bf16.msra.mxu0 %v3697_v10 }
 0x5f6   : > { %3403 = vmatprep.subr.bf16.mxu0 %v4193_v2 }
 0x639   : > { %v4621_v43 = vpop.f32.mrf.mxu1 }
 0x63b   : > { %v3377_v45 = vpop.f32.mrf.mxu1 }
 0x63d   : > { %v1180_v46 = vpop.f32.mrf.mxu1 }
 0x63f   : > { %v3378_v47 = vpop.f32.mrf.mxu1 }
 0x6ac   : > { %v4623_v49 = vpop.f32.mrf.mxu0 }
 0x6ad   : > { %v1178_v29 = vadd.f32 %v4621_v43, %v4623_v49  ;;  %v3698_v43 = vld [vmem:[%s4599_s14 + $0x18] sm:$0xff]  }
 0x6ae   : > { %v3371_v50 = vpop.f32.mrf.mxu0 }
 0x6b0   : > { %v1131_v51 = vpop.f32.mrf.mxu0 }
 0x6b2   : > { %v3372_v52 = vpop.f32.mrf.mxu0 }
 0x6b4   : > { %v1227_v53 = vpop.f32.mrf.mxu0 }
 0x6b5   : > { %v1233_v54 = vsel %vm910_vm3, %v1227_v53, -inf }
 0x6b6   : > { %1234 = vmax.xlane.f32.xlu0 %v1233_v54  ;;  %v3383_v56 = vpop.f32.mrf.mxu0 }
 0x6b8   : > { %v1230_v57 = vpop.f32.mrf.mxu0 }
 0x6ba   : > { %v3384_v58 = vpop.f32.mrf.mxu0 }
 0x6cc   : > { %1245 = vrot.lane.b32.xlu0 %v4560_v44, %s4197_s1 }
 0x6d0   : > { %1344 = vrot.lane.b32.xlu0 %v4571_v55, %s4198_s4 }
 0x73f   : > { %v1235_v59 = vpop.xlane.xlu0 %1234 }
 0x740   : > { %v1236_v60 = vsub.f32 %v1227_v53, %v1235_v59 }
 0x742   : > { %v1237_v61 = vmul.f32 1.442695, %v1236_v60 }
 0x743   : > { %v1246_v62 = vpop.permute.xlu0 %1245 }
 0x744   : > { %3793 = vpow2.f32 %v1237_v61  ;;  %v1251_v63 = vsel %vm926_vm1, %v1246_v62, 0 }
 0x745   : > { %3386 = vmatpush3.bf16.msra.mxu1 %v1251_v63 }
 0x746   : > { %3397 = vmatprep.subr.bf16.mxu1 %v4193_v2 }
 0x747   : > { %v1345_v9 = vpop.permute.xlu0 %1344 }
 0x751   : > { %v3794_v0 = vpop.eup %3793 }
 0x752   : > { %v1239_v1 = vsel %vm910_vm3, %v3794_v0, 0.0 }
 0x753   : > { %1240 = vadd.xlane.f32.xlu1 %v1239_v1 }
 0x764   : > { %1346 = vrot.lane.b32.xlu1 %v4562_v48, %s4198_s4 }
 0x7dc   : > { %v1241_v3 = vpop.xlane.xlu1 %1240 }
 0x7dd   : > { %3795 = vrcp.f32 %v1241_v3 }
 0x7e0   : > { %v1347_v6 = vpop.permute.xlu1 %1346 }
 0x7e1   : > { %v1352_v8 = vsel %vm863_vm2, %v1347_v6, 0 }
 0x7ea   : > { %v3796_v4 = vpop.eup %3795 }
 0x7eb   : > { %v1243_v5 = vmul.f32 %v3796_v4, %v3794_v0 }
 0x7ed   : > { %v1244_v7 = vpack.c.bf16 %v1243_v5, %v1243_v5 }
 0x7ef   : > { %3388 = vmatmul.mubr.msk.bf16.vlgmr.msra.gmra.mxu1 %vm910_vm3, %v1244_v7 }
 0x7f0   : > { %3398 = vmatpush3.bf16.xpose.msra.mxu1 %v1352_v8  ;;  %3399 = vmatprep.mubr.msk.bf16.mxu1 %vm4195_vm0, %v4193_v2 }
 0x7f1   : > { %3409 = vmatprep.subr.bf16.mxu1 %v4193_v2 }
 0x7f7   : > { %3400 = vmatmul.mubr.msk.bf16.vlgmr.msra.gmra.mxu1 %vm863_vm2, %v1345_v9 }
 0x7f8   : > { %3411 = vmatprep.mubr.msk.bf16.mxu1 %vm4195_vm0, %v4193_v2  ;;  %3410 = vmatpush3.bf16.msra.mxu1 %v3698_v43 }
 0x7f9   : > { %3421 = vmatprep.subr.bf16.mxu1 %v4193_v2 }
 0x8af   : > { %v1287_v11 = vpop.f32.mrf.mxu1 }
 0x8b0   : > { %v1293_v12 = vpack.c.bf16 %v1287_v11, %v1287_v11 }
 0x8b1   : > { %v3389_v13 = vpop.f32.mrf.mxu1 }
 0x8b2   : > { %3394 = vmatmul.mubr.msk.bf16.vlgmr.msra.gmra.mxu0 %vm863_vm2, %v1293_v12  ;;  %v3699_v13 = vld [vmem:[%s4599_s14 + $0x20] sm:$0xff]  }
 0x8b3   : > { %v1290_v14 = vpop.f32.mrf.mxu1  ;;  %3405 = vmatprep.mubr.msk.bf16.mxu0 %vm4195_vm0, %v4193_v2 }
 0x8b5   : > { %v3390_v15 = vpop.f32.mrf.mxu1 }
 0x8b7   : > { %v1388_v16 = vpop.f32.mrf.mxu1 }
 0x8b8   : > { %v1394_v17 = vsel %vm910_vm3, %v1388_v16, -inf }
 0x8b9   : > { %1395 = vmax.xlane.f32.xlu0 %v1394_v17  ;;  %v3401_v18 = vpop.f32.mrf.mxu1 }
 0x8bb   : > { %v1391_v19 = vpop.f32.mrf.mxu1 }
 0x8bd   : > { %v3402_v20 = vpop.f32.mrf.mxu1 }
 0x8cf   : > { %1406 = vrot.lane.b32.xlu0 %v4560_v44, %s4198_s4 }
 0x8d3   : > { %1505 = vrot.lane.b32.xlu0 %v4571_v55, %s4199_s17 }
 0x942   : > { %v1396_v21 = vpop.xlane.xlu0 %1395 }
 0x943   : > { %v1397_v22 = vsub.f32 %v1388_v16, %v1396_v21 }
 0x945   : > { %v1398_v24 = vmul.f32 1.442695, %v1397_v22 }
 0x946   : > { %v1407_v25 = vpop.permute.xlu0 %1406 }
 0x947   : > { %3797 = vpow2.f32 %v1398_v24  ;;  %v1412_v26 = vsel %vm926_vm1, %v1407_v25, 0 }
 0x948   : > { %3404 = vmatpush3.bf16.msra.mxu0 %v1412_v26 }
 0x949   : > { %3415 = vmatprep.subr.bf16.mxu0 %v4193_v2 }
 0x94a   : > { %v1506_v42 = vpop.permute.xlu0 %1505 }
 0x954   : > { %v3798_v27 = vpop.eup %3797 }
 0x955   : > { %v1400_v28 = vsel %vm910_vm3, %v3798_v27, 0.0 }
 0x956   : > { %1401 = vadd.xlane.f32.xlu1 %v1400_v28 }
 0x967   : > { %1507 = vrot.lane.b32.xlu1 %v4562_v48, %s4199_s17 }
 0x972   : > { %v1337_v30 = vpop.f32.mrf.mxu0 }
 0x973   : > { %v1343_v31 = vadd.f32 %v1337_v30, %v1178_v29 }
 0x974   : > { %v3395_v32 = vpop.f32.mrf.mxu0 }
 0x976   : > { %v1340_v33 = vpop.f32.mrf.mxu0 }
 0x978   : > { %v3396_v34 = vpop.f32.mrf.mxu0 }
 0x9df   : > { %v1402_v35 = vpop.xlane.xlu1 %1401 }
 0x9e0   : > { %3799 = vrcp.f32 %v1402_v35 }
 0x9e3   : > { %v1508_v38 = vpop.permute.xlu1 %1507 }
 0x9e4   : > { %v1513_v41 = vsel %vm863_vm2, %v1508_v38, 0 }
 0x9ed   : > { %v3800_v36 = vpop.eup %3799 }
 0x9ee   : > { %v1404_v37 = vmul.f32 %v3800_v36, %v3798_v27 }
 0x9f0   : > { %v1405_v39 = vpack.c.bf16 %v1404_v37, %v1404_v37 }
 0x9f2   : > { %3406 = vmatmul.mubr.msk.bf16.vlgmr.msra.gmra.mxu0 %vm910_vm3, %v1405_v39 }
 0x9f3   : > { %3416 = vmatpush3.bf16.xpose.msra.mxu0 %v1513_v41  ;;  %3417 = vmatprep.mubr.msk.bf16.mxu0 %vm4195_vm0, %v4193_v2 }
 0x9f4   : > { %3427 = vmatprep.subr.bf16.mxu0 %v4193_v2 }
 0x9fa   : > { %3418 = vmatmul.mubr.msk.bf16.vlgmr.msra.gmra.mxu0 %vm863_vm2, %v1506_v42 }
 0x9fb   : > { %3429 = vmatprep.mubr.msk.bf16.mxu0 %vm4195_vm0, %v4193_v2  ;;  %3428 = vmatpush3.bf16.msra.mxu0 %v3699_v13  ;;  %v3701_v13 = vld [vmem:[%s4599_s14 + $0x30] sm:$0xff]  }
 0x9fc   : > { %3439 = vmatprep.subr.bf16.mxu0 %v4193_v2 }
 0xab2   : > { %v1448_v45 = vpop.f32.mrf.mxu0 }
 0xab3   : > { %v1454_v46 = vpack.c.bf16 %v1448_v45, %v1448_v45 }
 0xab4   : > { %v3407_v47 = vpop.f32.mrf.mxu0 }
 0xab5   : > { %3412 = vmatmul.mubr.msk.bf16.vlgmr.msra.gmra.mxu1 %vm863_vm2, %v1454_v46  ;;  %v3700_v46 = vld [vmem:[%s4599_s14 + $0x28] sm:$0xff]  }
 0xab6   : > { %v1451_v49 = vpop.f32.mrf.mxu0  ;;  %3423 = vmatprep.mubr.msk.bf16.mxu1 %vm4195_vm0, %v4193_v2 }
 0xab8   : > { %v3408_v50 = vpop.f32.mrf.mxu0 }
 0xaba   : > { %v1549_v51 = vpop.f32.mrf.mxu0 }
 0xabb   : > { %v1555_v52 = vsel %vm910_vm3, %v1549_v51, -inf }
 0xabc   : > { %1556 = vmax.xlane.f32.xlu0 %v1555_v52  ;;  %v3419_v53 = vpop.f32.mrf.mxu0 }
 0xabe   : > { %v1552_v54 = vpop.f32.mrf.mxu0 }
 0xac0   : > { %v3420_v56 = vpop.f32.mrf.mxu0 }
 0xad2   : > { %1567 = vrot.lane.b32.xlu0 %v4560_v44, %s4199_s17 }
 0xad6   : > { %1666 = vrot.lane.b32.xlu0 %v4571_v55, %s4200_s19 }
 0xb45   : > { %v1557_v57 = vpop.xlane.xlu0 %1556 }
 0xb46   : > { %v1558_v58 = vsub.f32 %v1549_v51, %v1557_v57 }
 0xb48   : > { %v1559_v59 = vmul.f32 1.442695, %v1558_v58 }
 0xb49   : > { %v1568_v60 = vpop.permute.xlu0 %1567 }
 0xb4a   : > { %3801 = vpow2.f32 %v1559_v59  ;;  %v1573_v61 = vsel %vm926_vm1, %v1568_v60, 0 }
 0xb4b   : > { %3422 = vmatpush3.bf16.msra.mxu1 %v1573_v61 }
 0xb4c   : > { %3433 = vmatprep.subr.bf16.mxu1 %v4193_v2 }
 0xb4d   : > { %v1667_v12 = vpop.permute.xlu0 %1666 }
 0xb57   : > { %v3802_v62 = vpop.eup %3801 }
 0xb58   : > { %v1561_v63 = vsel %vm910_vm3, %v3802_v62, 0.0 }
 0xb59   : > { %1562 = vadd.xlane.f32.xlu1 %v1561_v63 }
 0xb6a   : > { %1668 = vrot.lane.b32.xlu1 %v4562_v48, %s4200_s19 }
 0xb75   : > { %v1498_v0 = vpop.f32.mrf.mxu1 }
 0xb76   : > { %v1504_v1 = vadd.f32 %v1498_v0, %v1343_v31 }
 0xb77   : > { %v3413_v3 = vpop.f32.mrf.mxu1 }
 0xb79   : > { %v1501_v4 = vpop.f32.mrf.mxu1 }
 0xb7b   : > { %v3414_v5 = vpop.f32.mrf.mxu1 }
 0xbe2   : > { %v1563_v6 = vpop.xlane.xlu1 %1562 }
 0xbe3   : > { %3803 = vrcp.f32 %v1563_v6 }
 0xbe6   : > { %v1669_v9 = vpop.permute.xlu1 %1668 }
 0xbe7   : > { %v1674_v11 = vsel %vm863_vm2, %v1669_v9, 0 }
 0xbf0   : > { %v3804_v7 = vpop.eup %3803 }
 0xbf1   : > { %v1565_v8 = vmul.f32 %v3804_v7, %v3802_v62 }
 0xbf3   : > { %v1566_v10 = vpack.c.bf16 %v1565_v8, %v1565_v8 }
 0xbf5   : > { %3424 = vmatmul.mubr.msk.bf16.vlgmr.msra.gmra.mxu1 %vm910_vm3, %v1566_v10 }
 0xbf6   : > { %3434 = vmatpush3.bf16.xpose.msra.mxu1 %v1674_v11  ;;  %3435 = vmatprep.mubr.msk.bf16.mxu1 %vm4195_vm0, %v4193_v2 }
 0xbf7   : > { %3445 = vmatprep.subr.bf16.mxu1 %v4193_v2 }
 0xbfd   : > { %3436 = vmatmul.mubr.msk.bf16.vlgmr.msra.gmra.mxu1 %vm863_vm2, %v1667_v12 }
 0xbfe   : > { %3447 = vmatprep.mubr.msk.bf16.mxu1 %vm4195_vm0, %v4193_v2  ;;  %3446 = vmatpush3.bf16.msra.mxu1 %v3700_v46 }
 0xbff   : > { %3457 = vmatprep.subr.bf16.mxu1 %v4193_v2 }
 0xcb5   : > { %v1609_v14 = vpop.f32.mrf.mxu1 }
 0xcb6   : > { %v1615_v15 = vpack.c.bf16 %v1609_v14, %v1609_v14 }
 0xcb7   : > { %v3425_v16 = vpop.f32.mrf.mxu1 }
 0xcb8   : > { %3430 = vmatmul.mubr.msk.bf16.vlgmr.msra.gmra.mxu0 %vm863_vm2, %v1615_v15 }
 0xcb9   : > { %v1612_v17 = vpop.f32.mrf.mxu1  ;;  %3441 = vmatprep.mubr.msk.bf16.mxu0 %vm4195_vm0, %v4193_v2 }
 0xcbb   : > { %v3426_v18 = vpop.f32.mrf.mxu1 }
 0xcbd   : > { %v1710_v19 = vpop.f32.mrf.mxu1 }
 0xcbe   : > { %v1716_v20 = vsel %vm910_vm3, %v1710_v19, -inf }
 0xcbf   : > { %1717 = vmax.xlane.f32.xlu0 %v1716_v20  ;;  %v3437_v21 = vpop.f32.mrf.mxu1 }
 0xcc1   : > { %v1713_v22 = vpop.f32.mrf.mxu1 }
 0xcc3   : > { %v3438_v24 = vpop.f32.mrf.mxu1 }
 0xcd5   : > { %1728 = vrot.lane.b32.xlu0 %v4560_v44, %s4200_s19  ;;  %s4943_s19 = sld [smem:[#allocation35_spill]] }
 0xcd9   : > { %1827 = vrot.lane.b32.xlu0 %v4571_v55, %s4201_s20 }
 0xd48   : > { %v1718_v25 = vpop.xlane.xlu0 %1717 }
 0xd49   : > { %v1719_v26 = vsub.f32 %v1710_v19, %v1718_v25 }
 0xd4b   : > { %v1720_v27 = vmul.f32 1.442695, %v1719_v26 }
 0xd4c   : > { %v1729_v28 = vpop.permute.xlu0 %1728 }
 0xd4d   : > { %3805 = vpow2.f32 %v1720_v27  ;;  %v1734_v29 = vsel %vm926_vm1, %v1729_v28, 0 }
 0xd4e   : > { %3440 = vmatpush3.bf16.msra.mxu0 %v1734_v29 }
 0xd4f   : > { %3451 = vmatprep.subr.bf16.mxu0 %v4193_v2 }
 0xd50   : > { %v1828_v45 = vpop.permute.xlu0 %1827 }
 0xd5a   : > { %v3806_v30 = vpop.eup %3805 }
 0xd5b   : > { %v1722_v31 = vsel %vm910_vm3, %v3806_v30, 0.0 }
 0xd5c   : > { %1723 = vadd.xlane.f32.xlu1 %v1722_v31 }
 0xd6d   : > { %1829 = vrot.lane.b32.xlu1 %v4562_v48, %s4201_s20 }
 0xd78   : > { %v1659_v32 = vpop.f32.mrf.mxu0 }
 0xd79   : > { %v1665_v33 = vadd.f32 %v1659_v32, %v1504_v1  ;;  %v3702_v32 = vld [vmem:[%s4599_s14 + $0x38] sm:$0xff]   ;;  %s2225_s14 = scalar_lea.vmem %s4895_s9, %s3146_s11 }
 0xd7a   : > { %v3431_v34 = vpop.f32.mrf.mxu0 }
 0xd7c   : > { %v1662_v35 = vpop.f32.mrf.mxu0 }
 0xd7e   : > { %v3432_v36 = vpop.f32.mrf.mxu0 }
 0xde5   : > { %v1724_v37 = vpop.xlane.xlu1 %1723 }
 0xde6   : > { %3807 = vrcp.f32 %v1724_v37 }
 0xde9   : > { %v1830_v41 = vpop.permute.xlu1 %1829 }
 0xdea   : > { %v1835_v43 = vsel %vm863_vm2, %v1830_v41, 0 }
 0xdf3   : > { %v3808_v38 = vpop.eup %3807 }
 0xdf4   : > { %v1726_v39 = vmul.f32 %v3808_v38, %v3806_v30 }
 0xdf6   : > { %v1727_v42 = vpack.c.bf16 %v1726_v39, %v1726_v39 }
 0xdf8   : > { %3442 = vmatmul.mubr.msk.bf16.vlgmr.msra.gmra.mxu0 %vm910_vm3, %v1727_v42 }
 0xdf9   : > { %3452 = vmatpush3.bf16.xpose.msra.mxu0 %v1835_v43  ;;  %3453 = vmatprep.mubr.msk.bf16.mxu0 %vm4195_vm0, %v4193_v2 }
 0xdfa   : > { %3463 = vmatprep.subr.bf16.mxu0 %v4193_v2 }
 0xe00   : > { %3454 = vmatmul.mubr.msk.bf16.vlgmr.msra.gmra.mxu0 %vm863_vm2, %v1828_v45 }
 0xe01   : > { %3465 = vmatprep.mubr.msk.bf16.mxu0 %vm4195_vm0, %v4193_v2  ;;  %3464 = vmatpush3.bf16.msra.mxu0 %v3701_v13  ;;  %v3730_v13 = vld [vmem:[%s4758_s30 + $0x68] ss:$16 sps:$4 sm:$0xff]  }
 0xe02   : > { %3475 = vmatprep.subr.bf16.mxu0 %v4193_v2 }
 0xeb8   : > { %v1770_v47 = vpop.f32.mrf.mxu0 }
 0xeb9   : > { %v1776_v49 = vpack.c.bf16 %v1770_v47, %v1770_v47 }
 0xeba   : > { %v3443_v50 = vpop.f32.mrf.mxu0 }
 0xebb   : > { %3448 = vmatmul.mubr.msk.bf16.vlgmr.msra.gmra.mxu1 %vm863_vm2, %v1776_v49  ;;  %v3141_v49 = vld [vmem:[%s2149_s8] ss:$0 sm:$0xff] }
 0xebc   : > { %v1773_v51 = vpop.f32.mrf.mxu0  ;;  %3459 = vmatprep.mubr.msk.bf16.mxu1 %vm4195_vm0, %v4193_v2 }
 0xebe   : > { %v3444_v52 = vpop.f32.mrf.mxu0 }
 0xec0   : > { %v1871_v53 = vpop.f32.mrf.mxu0 }
 0xec1   : > { %v1877_v54 = vsel %vm910_vm3, %v1871_v53, -inf }
 0xec2   : > { %1878 = vmax.xlane.f32.xlu1 %v1877_v54  ;;  %v3455_v56 = vpop.f32.mrf.mxu0 }
 0xec4   : > { %v1874_v57 = vpop.f32.mrf.mxu0 }
 0xec5   : > { %v3705_v57 = vld [vmem:[%s4758_s30 + $0xe4] ss:$16 sps:$4 sm:$0xff]  }
 0xec6   : > { %v3456_v58 = vpop.f32.mrf.mxu0 }
 0xec7   : > { %v3706_v58 = vld [vmem:[%s4758_s30 + $0xe8] ss:$16 sps:$4 sm:$0xff]  }
 0xed3   : > { %1990 = vrot.lane.b32.xlu1 %v4562_v48, %s4202_s6 }
 0xed7   : > { %1988 = vrot.lane.b32.xlu1 %v4571_v55, %s4202_s6 }
 0xf4b   : > { %v1879_v59 = vpop.xlane.xlu1 %1878 }
 0xf4c   : > { %v1880_v60 = vsub.f32 %v1871_v53, %v1879_v59  ;;  %v3708_v59 = vld [vmem:[%s4758_s30 + $0xec] ss:$16 sps:$4 sm:$0xff]  }
 0xf4e   : > { %v1881_v61 = vmul.f32 1.442695, %v1880_v60  ;;  %v3711_v60 = vld [vmem:[%s4758_s30 + $0xc4] ss:$16 sps:$4 sm:$0xff]  }
 0xf4f   : > { %v1991_v9 = vpop.permute.xlu1 %1990 }
 0xf50   : > { %3809 = vpow2.f32 %v1881_v61  ;;  %v1996_v11 = vsel %vm863_vm2, %v1991_v9, 0  ;;  %v3712_v61 = vld [vmem:[%s4758_s30 + $0xc8] ss:$16 sps:$4 sm:$0xff]   ;;  %v3726_v9 = vld [vmem:[%s4758_s30 + $0x8c] ss:$16 sps:$4 sm:$0xff]  }
 0xf53   : > { %v1989_v12 = vpop.permute.xlu1 %1988 }
 0xf5d   : > { %v3810_v62 = vpop.eup %3809 }
 0xf5e   : > { %v1883_v63 = vsel %vm910_vm3, %v3810_v62, 0.0 }
 0xf5f   : > { %1884 = vadd.xlane.f32.xlu0 %v1883_v63 }
 0xf75   : > { %1889 = vrot.lane.b32.xlu0 %v4560_v44, %s4201_s20  ;;  %s2580_s20 = scalar_lea.vmem %s4943_s19, %s4159_s24 }
 0xf7b   : > { %v1820_v0 = vpop.f32.mrf.mxu1 }
 0xf7c   : > { %v1826_v1 = vadd.f32 %v1820_v0, %v1665_v33 }
 0xf7d   : > { %v3449_v3 = vpop.f32.mrf.mxu1 }
 0xf7f   : > { %v1823_v4 = vpop.f32.mrf.mxu1 }
 0xf80   : > { %v3717_v4 = vld [vmem:[%s4758_s30 + $0xa4] ss:$16 sps:$4 sm:$0xff]  }
 0xf81   : > { %v3450_v5 = vpop.f32.mrf.mxu1 }
 0xf82   : > { %v3720_v5 = vld [vmem:[%s4758_s30 + $0xac] ss:$16 sps:$4 sm:$0xff]  }
 0xfe8   : > { %v1885_v48 = vpop.xlane.xlu0 %1884 }
 0xfe9   : > { %3811 = vrcp.f32 %v1885_v48  ;;  %v3715_v48 = vld [vmem:[%s4758_s30 + $0xa0] ss:$16 sps:$4 sm:$0xff]  }
 0xfec   : > { %v1890_v6 = vpop.permute.xlu0 %1889 }
 0xfed   : > { %v1895_v55 = vsel %vm926_vm1, %v1890_v6, 0  ;;  %v3718_v6 = vld [vmem:[%s4758_s30 + $0xa8] ss:$16 sps:$4 sm:$0xff]  }
 0xfee   : > { %3458 = vmatpush3.bf16.msra.mxu1 %v1895_v55  ;;  %v3721_v55 = vld [vmem:[%s4758_s30 + $0x80] ss:$16 sps:$4 sm:$0xff]  }
 0xfef   : > { %3469 = vmatprep.subr.bf16.mxu1 %v4193_v2 }
 0xff6   : > { %v3812_v7 = vpop.eup %3811 }
 0xff7   : > { %v1887_v8 = vmul.f32 %v3812_v7, %v3810_v62  ;;  %v3714_v62 = vld [vmem:[%s4758_s30 + $0xcc] ss:$16 sps:$4 sm:$0xff]   ;;  %v3723_v7 = vld [vmem:[%s4758_s30 + $0x84] ss:$16 sps:$4 sm:$0xff]  }
 0xff9   : > { %v1888_v10 = vpack.c.bf16 %v1887_v8, %v1887_v8  ;;  %v3724_v8 = vld [vmem:[%s4758_s30 + $0x88] ss:$16 sps:$4 sm:$0xff]  }
 0xffb   : > { %3460 = vmatmul.mubr.msk.bf16.vlgmr.msra.gmra.mxu1 %vm910_vm3, %v1888_v10  ;;  %v3729_v10 = vld [vmem:[%s4758_s30 + $0x64] ss:$16 sps:$4 sm:$0xff]  }
 0xffc   : > { %3470 = vmatpush3.bf16.xpose.msra.mxu1 %v1996_v11  ;;  %3471 = vmatprep.mubr.msk.bf16.mxu1 %vm4195_vm0, %v4193_v2  ;;  %v3732_v11 = vld [vmem:[%s4758_s30 + $0x6c] ss:$16 sps:$4 sm:$0xff]  }
 0xffd   : > { %3481 = vmatprep.subr.bf16.mxu1 %v4193_v2 }
0x1003   : > { %3472 = vmatmul.mubr.msk.bf16.vlgmr.msra.gmra.mxu1 %vm863_vm2, %v1989_v12  ;;  %v3727_v12 = vld [vmem:[%s4758_s30 + $0x60] ss:$16 sps:$4 sm:$0xff]  }
0x1004   : > { %3483 = vmatprep.mubr.msk.bf16.mxu1 %vm4195_vm0, %v4193_v2  ;;  %3482 = vmatpush3.bf16.msra.mxu1 %v3702_v32  ;;  %v3142_v32 = vld [vmem:[%s2159_s16] ss:$0 sm:$0xff] }
0x1005   : > { %2449 = vmatprep.subr.bf16.mxu1 %v3708_v59  ;;  %v3771_v59 = vld [vmem:[%s4768_s13 + $0x50] sm:$0xff]  }
0x10bb   : > { %v1931_v14 = vpop.f32.mrf.mxu1 }
0x10bc   : > { %v1937_v15 = vpack.c.bf16 %v1931_v14, %v1931_v14  ;;  %v3735_v14 = vld [vmem:[%s4758_s30 + $0x44] ss:$16 sps:$4 sm:$0xff]  }
0x10bd   : > { %v3461_v16 = vpop.f32.mrf.mxu1 }
0x10be   : > { %3466 = vmatmul.mubr.msk.bf16.vlgmr.msra.gmra.mxu0 %vm863_vm2, %v1937_v15  ;;  %v3738_v15 = vld [vmem:[%s4758_s30 + $0x4c] ss:$16 sps:$4 sm:$0xff]   ;;  %v3733_v16 = vld [vmem:[%s4758_s30 + $0x40] ss:$16 sps:$4 sm:$0xff]  }
0x10bf   : > { %v1934_v17 = vpop.f32.mrf.mxu1  ;;  %3477 = vmatprep.mubr.msk.bf16.mxu0 %vm4195_vm0, %v4193_v2 }
0x10c0   : > { %v3736_v17 = vld [vmem:[%s4758_s30 + $0x48] ss:$16 sps:$4 sm:$0xff]  }
0x10c1   : > { %v3462_v18 = vpop.f32.mrf.mxu1 }
0x10c2   : > { %v3741_v18 = vld [vmem:[%s4758_s30 + $0x24] ss:$16 sps:$4 sm:$0xff]  }
0x10c3   : > { %v2032_v19 = vpop.f32.mrf.mxu1 }
0x10c4   : > { %v2038_v20 = vsel %vm910_vm3, %v2032_v19, -inf }
0x10c5   : > { %2039 = vmax.xlane.f32.xlu0 %v2038_v20  ;;  %v3473_v21 = vpop.f32.mrf.mxu1  ;;  %v3739_v20 = vld [vmem:[%s4758_s30 + $0x20] ss:$16 sps:$4 sm:$0xff]  }
0x10c6   : > { %v3742_v21 = vld [vmem:[%s4758_s30 + $0x28] ss:$16 sps:$4 sm:$0xff]  }
0x10c7   : > { %v2035_v22 = vpop.f32.mrf.mxu1 }
0x10c8   : > { %v3747_v22 = vld [vmem:[%s4758_s30 + $0x4] ss:$16 sps:$4 sm:$0xff]  }
0x10c9   : > { %v3474_v24 = vpop.f32.mrf.mxu1 }
0x10ca   : > { %v3750_v24 = vld [vmem:[%s4758_s30 + $0xc] ss:$16 sps:$4 sm:$0xff]  }
0x10db   : > { %2050 = vrot.lane.b32.xlu0 %v4560_v44, %s4202_s6 }
0x114e   : > { %v2040_v25 = vpop.xlane.xlu0 %2039 }
0x114f   : > { %v2041_v26 = vsub.f32 %v2032_v19, %v2040_v25  ;;  %v3744_v19 = vld [vmem:[%s4758_s30 + $0x2c] ss:$16 sps:$4 sm:$0xff]   ;;  %v3745_v25 = vld [vmem:[%s4758_s30] ss:$16 sps:$4 sm:$0xff]  }
0x1151   : > { %v2042_v27 = vmul.f32 1.442695, %v2041_v26  ;;  %v3748_v26 = vld [vmem:[%s4758_s30 + $0x8] ss:$16 sps:$4 sm:$0xff]  }
0x1152   : > { %v2051_v28 = vpop.permute.xlu0 %2050 }
0x1153   : > { %3813 = vpow2.f32 %v2042_v27  ;;  %v2056_v29 = vsel %vm926_vm1, %v2051_v28, 0  ;;  %v3751_v27 = vld [vmem:[%s4768_s13 + $0x78] sm:$0xff]  }
0x1154   : > { %3476 = vmatpush3.bf16.msra.mxu0 %v2056_v29  ;;  %v3752_v28 = vld [vmem:[%s4768_s13 + $0xf8] sm:$0xff]  }
0x1155   : > { %2408 = vmatprep.subr.bf16.mxu0 %v3705_v57  ;;  %v3769_v57 = vld [vmem:[%s4768_s13 + $0x18] sm:$0xff]  }
0x1160   : > { %v3814_v2 = vpop.eup %3813 }
0x1161   : > { %v2044_v30 = vsel %vm910_vm3, %v3814_v2, 0.0 }
0x1162   : > { %2045 = vadd.xlane.f32.xlu1 %v2044_v30 }
0x117e   : > { %v1981_v31 = vpop.f32.mrf.mxu0 }
0x117f   : > { %v1987_v33 = vadd.f32 %v1981_v31, %v1826_v1 }
0x1180   : > { %v3467_v34 = vpop.f32.mrf.mxu0 }
0x1181   : > { %v3143_v34 = vld [vmem:[%s2161_s15] ss:$0 sm:$0xff] }
0x1182   : > { %v1984_v35 = vpop.f32.mrf.mxu0 }
0x1184   : > { %v3468_v36 = vpop.f32.mrf.mxu0 }
0x11eb   : > { %v2046_v44 = vpop.xlane.xlu1 %2045 }
0x11ec   : > { %3815 = vrcp.f32 %v2046_v44  ;;  %v3753_v44 = vld [vmem:[%s4768_s13 + $0x38] sm:$0xff]  }
0x11f9   : > { %v3816_v37 = vpop.eup %3815 }
0x11fa   : > { %v2048_v38 = vmul.f32 %v3816_v37, %v3814_v2  ;;  %v3754_v37 = vld [vmem:[%s4768_s13 + $0xb8] sm:$0xff]  }
0x11fc   : > { %v2049_v39 = vpack.c.bf16 %v2048_v38, %v2048_v38 }
0x11fe   : > { %3478 = vmatmul.mubr.msk.bf16.vlgmr.msra.gmra.mxu0 %vm910_vm3, %v2049_v39  ;;  %v3755_v39 = vld [vmem:[%s4768_s13 + $0x70] sm:$0xff]  }
0x11ff   : > { %2440 = vmatprep.mubr.bf16.mxu0 %v4194_v23 }
0x12be   : > { %v2092_v41 = vpop.f32.mrf.mxu0 }
0x12bf   : > { %v2098_v42 = vpack.c.bf16 %v2092_v41, %v2092_v41  ;;  %v3756_v41 = vld [vmem:[%s4768_s13 + $0xf0] sm:$0xff]  }
0x12c0   : > { %v3479_v43 = vpop.f32.mrf.mxu0 }
0x12c1   : > { %3484 = vmatmul.mubr.msk.bf16.vlgmr.msra.gmra.mxu1 %vm863_vm2, %v2098_v42  ;;  %v3757_v42 = vld [vmem:[%s4768_s13 + $0x30] sm:$0xff]  }
0x12c2   : > { %v2095_v45 = vpop.f32.mrf.mxu0  ;;  %2481 = vmatprep.mubr.bf16.mxu1 %v4194_v23  ;;  %v3703_v23 = vld [vmem:[%s4758_s30 + $0xe0] ss:$16 sps:$4 sm:$0xff]   ;;  %2450 = vmatpush1.bf16.msra.mxu1 %v3706_v58  ;;  %v3770_v58 = vld [vmem:[%s4768_s13 + $0x98] sm:$0xff]  }
0x12c3   : > { %2409 = vmatpush1.bf16.msra.mxu0 %v3703_v23  ;;  %2451 = vmatprep.subr.bf16.mxu1 %v3714_v62  ;;  %v3758_v43 = vld [vmem:[%s4768_s13 + $0xb0] sm:$0xff]   ;;  %v3759_v45 = vld [vmem:[%s4768_s13 + $0x68] sm:$0xff]   ;;  %v3768_v23 = vld [vmem:[%s4768_s13 + $0xd8] sm:$0xff]  }
0x12c4   : > { %v3480_v46 = vpop.f32.mrf.mxu0  ;;  %2410 = vmatprep.subr.bf16.mxu0 %v3711_v60  ;;  %v3773_v60 = vld [vmem:[%s4768_s13 + $0x10] sm:$0xff]   ;;  %v3775_v62 = vld [vmem:[%s4768_s13 + $0x48] sm:$0xff]  }
0x12c5   : > { %v3760_v46 = vld [vmem:[%s4768_s13 + $0xe8] sm:$0xff]  }
0x12c6   : > { %2452 = vmatpush1.bf16.msra.mxu1 %v3712_v61  ;;  %v3774_v61 = vld [vmem:[%s4768_s13 + $0x90] sm:$0xff]  }
0x12c7   : > { %2453 = vmatprep.subr.bf16.mxu1 %v3720_v5  ;;  %v3781_v5 = vld [vmem:[%s4768_s13] sm:$0xff]  }
0x12ca   : > { %2454 = vmatpush1.bf16.msra.mxu1 %v3718_v6  ;;  %v2228_v6 = vlaneseq }
0x12cb   : > { %2455 = vmatprep.subr.bf16.mxu1 %v3726_v9  ;;  %v2226_v9 = vld [vmem:[%s2225_s14] sm:$0xf] }
0x12ce   : > { %2456 = vmatpush1.bf16.msra.mxu1 %v3724_v8 }
0x12cf   : > { %2457 = vmatprep.subr.bf16.mxu1 %v3732_v11 }
0x12d2   : > { %2458 = vmatpush1.bf16.msra.mxu1 %v3730_v13 }
0x12d3   : > { %2459 = vmatprep.subr.bf16.mxu1 %v3738_v15 }
0x12d6   : > { %2460 = vmatpush1.bf16.msra.mxu1 %v3736_v17 }
0x12d7   : > { %2461 = vmatprep.subr.bf16.mxu1 %v3744_v19 }
0x12da   : > { %2462 = vmatpush1.bf16.msra.mxu1 %v3742_v21 }
0x12db   : > { %2463 = vmatprep.subr.bf16.mxu1 %v3750_v24 }
0x12de   : > { %2464 = vmatpush1.bf16.msra.mxu1 %v3748_v26 }
0x12df   : > { %3301 = vmatprep.subr.bf16.mxu1 %v3752_v28 }
0x1381   : > { %v2142_v47 = vpop.f32.mrf.mxu1 }
0x1382   : > { %v2148_v50 = vadd.f32 %v2142_v47, %v1987_v33  ;;  %v3761_v47 = vld [vmem:[%s4768_s13 + $0x28] sm:$0xff]  }
0x1383   : > { %v3485_v51 = vpop.f32.mrf.mxu1 }
0x1384   : > { %v2157_v52 = vadd.f32 %v3141_v49, %v2148_v50  ;;  %v3762_v49 = vld [vmem:[%s4768_s13 + $0xa8] sm:$0xff]   ;;  %v3763_v50 = vld [vmem:[%s4768_s13 + $0x60] sm:$0xff]  }
0x1385   : > { %v2145_v53 = vpop.f32.mrf.mxu1  ;;  %v3764_v51 = vld [vmem:[%s4768_s13 + $0xe0] sm:$0xff]  }
0x1386   : > { %v4754_v54 = vadd.f32 %v2157_v52, %v4552_v40  ;;  %v3709_v40 = vld [vmem:[%s4758_s30 + $0xc0] ss:$16 sps:$4 sm:$0xff]  }
0x1387   : > { %v3486_v56 = vpop.f32.mrf.mxu1  ;;  %2411 = vmatpush1.bf16.msra.mxu0 %v3709_v40  ;;  %v3765_v52 = vld [vmem:[%s4768_s13 + $0x20] sm:$0xff]   ;;  %v3772_v40 = vld [vmem:[%s4768_s13 + $0xd0] sm:$0xff]  }
0x1388   : > { %2163 = vadd.xlane.f32.xlu1 %v4754_v54  ;;  %2412 = vmatprep.subr.bf16.mxu0 %v3717_v4  ;;  %v3766_v53 = vld [vmem:[%s4768_s13 + $0xa0] sm:$0xff]   ;;  %v3767_v56 = vld [vmem:[%s4768_s13 + $0x58] sm:$0xff]  }
0x1389   : > { %v3780_v4 = vld [vmem:[%s4768_s13 + $0xc0] sm:$0xff]  }
0x138b   : > { %2413 = vmatpush1.bf16.msra.mxu0 %v3715_v48  ;;  %v3782_v48 = vld [vmem:[%s4768_s13 + $0x80] sm:$0xff]  }
0x138c   : > { %2414 = vmatprep.subr.bf16.mxu0 %v3723_v7 }
0x138f   : > { %2415 = vmatpush1.bf16.msra.mxu0 %v3721_v55  ;;  %v2229_v55 = vshrl.u32 %v2228_v6, 7 }
0x1390   : > { %2416 = vmatprep.subr.bf16.mxu0 %v3729_v10 }
0x1391   : > { %v2230_v7 = vsub.s32 0, %v2229_v55  ;;  %v2238_v8 = vsub.s32 2, %v2229_v55  ;;  %v2234_v10 = vsub.s32 1, %v2229_v55  ;;  %v2242_v11 = vsub.s32 3, %v2229_v55 }
0x1393   : > { %2417 = vmatpush1.bf16.msra.mxu0 %v3727_v12  ;;  %v2231_v12 = vrot.slane %v2226_v9, %v2230_v7  ;;  %v2239_v13 = vrot.slane %v2226_v9, %v2238_v8  ;;  %v2243_v17 = vrot.slane %v2226_v9, %v2242_v11 }
0x1394   : > { %2418 = vmatprep.subr.bf16.mxu0 %v3735_v14 }
0x1397   : > { %2419 = vmatpush1.bf16.msra.mxu0 %v3733_v16  ;;  %v2235_v16 = vrot.slane %v2226_v9, %v2234_v10 }
0x1398   : > { %2420 = vmatprep.subr.bf16.mxu0 %v3741_v18 }
0x139b   : > { %2421 = vmatpush1.bf16.msra.mxu0 %v3739_v20 }
0x139c   : > { %2422 = vmatprep.subr.bf16.mxu0 %v3747_v22 }
0x139f   : > { %2423 = vmatpush1.bf16.msra.mxu0 %v3745_v25 }
0x13a0   : > { %3279 = vmatprep.subr.bf16.mxu0 %v3751_v27 }
0x1411   : > { %v2164_v63 = vpop.xlane.xlu1 %2163 }
0x1412   : > { %v2165_v0 = vmul.f32 0.0078125, %v2164_v63  ;;  %v3776_v63 = vld [vmem:[%s4768_s13 + $0xc8] sm:$0xff]  }
0x1414   : > { %v2166_v1 = vsub.f32 %v4754_v54, %v2165_v0  ;;  %v3777_v0 = vld [vmem:[%s4768_s13 + $0x8] sm:$0xff]  }
0x1416   : > { %v2167_v3 = vmul.f32 %v2166_v1, %v2166_v1 }
0x1418   : > { %2168 = vadd.xlane.f32.xlu1 %v2167_v3  ;;  %v3779_v3 = vld [vmem:[%s4768_s13 + $0x40] sm:$0xff]  }
0x14a1   : > { %v2169_v29 = vpop.xlane.xlu1 %2168 }
0x14a2   : > { %v2170_v2 = vmul.f32 0.0078125, %v2169_v29 }
0x14a4   : > { %v2171_v30 = vadd.f32 1e-05, %v2170_v2 }
0x14a6   : > { %3817 = vrsqrt.f32 %v2171_v30 }
0x14b3   : > { %v3818_v31 = vpop.eup %3817 }
0x14b4   : > { %v2173_v33 = vmul.f32 %v3818_v31, %v2166_v1  ;;  %v3778_v1 = vld [vmem:[%s4768_s13 + $0x88] sm:$0xff]  }
0x14b6   : > { %v2180_v35 = vmul.f32 %v3142_v32, %v2173_v33 }
0x14b8   : > { %v2187_v36 = vadd.f32 %v3143_v34, %v2180_v35 }
0x14ba   : > { %v2188_v38 = vpack.c.bf16 %v2187_v36, %v2187_v36 }
0x14bc   : > { %2441 = vmatmul.mubr.bf16.vlgmr.msra.gmra.mxu0 %v2188_v38  ;;  %2482 = vmatmul.mubr.bf16.vlgmr.msra.gmra.mxu1 %v2188_v38 }
0x14bd   : > { %3280 = vmatpush3.bf16.msra.mxu0 %v3753_v44  ;;  %3302 = vmatpush3.bf16.msra.mxu1 %v3754_v37 }
0x14be   : > { %3281 = vmatprep.subr.bf16.mxu0 %v3755_v39  ;;  %3303 = vmatprep.subr.bf16.mxu1 %v3756_v41 }
0x14c1   : > { %3282 = vmatpush3.bf16.msra.mxu0 %v3757_v42  ;;  %3304 = vmatpush3.bf16.msra.mxu1 %v3758_v43 }
0x14c2   : > { %3283 = vmatprep.subr.bf16.mxu0 %v3759_v45  ;;  %3305 = vmatprep.subr.bf16.mxu1 %v3760_v46 }
0x14c5   : > { %3284 = vmatpush3.bf16.msra.mxu0 %v3761_v47  ;;  %3306 = vmatpush3.bf16.msra.mxu1 %v3762_v49 }
0x14c6   : > { %3285 = vmatprep.subr.bf16.mxu0 %v3763_v50  ;;  %3307 = vmatprep.subr.bf16.mxu1 %v3764_v51 }
0x14c9   : > { %3286 = vmatpush3.bf16.msra.mxu0 %v3765_v52  ;;  %3308 = vmatpush3.bf16.msra.mxu1 %v3766_v53 }
0x14ca   : > { %3287 = vmatprep.subr.bf16.mxu0 %v3767_v56  ;;  %3309 = vmatprep.subr.bf16.mxu1 %v3768_v23 }
0x14cd   : > { %3288 = vmatpush3.bf16.msra.mxu0 %v3769_v57  ;;  %3310 = vmatpush3.bf16.msra.mxu1 %v3770_v58  ;;  %v3180_v57 = vld [vmem:[%s2580_s20] ss:$0 sm:$0xff] }
0x14ce   : > { %3289 = vmatprep.subr.bf16.mxu0 %v3771_v59  ;;  %3311 = vmatprep.subr.bf16.mxu1 %v3772_v40 }
0x14d1   : > { %3290 = vmatpush3.bf16.msra.mxu0 %v3773_v60  ;;  %3312 = vmatpush3.bf16.msra.mxu1 %v3774_v61 }
0x14d2   : > { %3291 = vmatprep.subr.bf16.mxu0 %v3775_v62  ;;  %3313 = vmatprep.subr.bf16.mxu1 %v3776_v63 }
0x14d5   : > { %3292 = vmatpush3.bf16.msra.mxu0 %v3777_v0  ;;  %3314 = vmatpush3.bf16.msra.mxu1 %v3778_v1 }
0x14d6   : > { %3293 = vmatprep.subr.bf16.mxu0 %v3779_v3  ;;  %3315 = vmatprep.subr.bf16.mxu1 %v3780_v4 }
0x14d9   : > { %3294 = vmatpush3.bf16.msra.mxu0 %v3781_v5  ;;  %3316 = vmatpush3.bf16.msra.mxu1 %v3782_v48 }
0x157c   : > { %v2442_v14 = vpop.f32.mrf.mxu0  ;;  %v2483_v15 = vpop.f32.mrf.mxu1 }
0x157d   : > { %v2443_v18 = vadd.f32 %v2442_v14, %v2231_v12  ;;  %v2484_v19 = vadd.f32 %v2483_v15, %v2239_v13 }
0x157e   : > { %v2444_v20 = vpop.f32.mrf.mxu0  ;;  %v2485_v21 = vpop.f32.mrf.mxu1 }
0x157f   : > { %v2494_v22 = vmul.f32 0.70710677, %v2443_v18  ;;  %v2496_v24 = vmul.f32 0.70710677, %v2484_v19  ;;  %v2445_v25 = vadd.f32 %v2444_v20, %v2235_v16  ;;  %v2486_v26 = vadd.f32 %v2485_v21, %v2243_v17 }
0x1580   : > { %v2446_v27 = vpop.f32.mrf.mxu0  ;;  %v2487_v28 = vpop.f32.mrf.mxu1  ;;  %v2490_v44 = vmul.f32 0.5, %v2443_v18  ;;  %v2492_v38 = vmul.f32 0.5, %v2484_v19 }
0x1581   : > { %3819 = verf.f32 %v2494_v22  ;;  %v2495_v29 = vmul.f32 0.70710677, %v2445_v25  ;;  %v2497_v31 = vmul.f32 0.70710677, %v2486_v26  ;;  %v2491_v39 = vmul.f32 0.5, %v2445_v25 }
0x1582   : > { %3821 = verf.f32 %v2496_v24  ;;  %v2447_v2 = vpop.f32.mrf.mxu0  ;;  %v2488_v30 = vpop.f32.mrf.mxu1  ;;  %v2493_v43 = vmul.f32 0.5, %v2486_v26 }
0x1583   : > { %3823 = verf.f32 %v2495_v29 }
0x1584   : > { %3825 = verf.f32 %v2497_v31 }
0x158e   : > { %v3820_v32 = vpop.eup %3819 }
0x158f   : > { %v3822_v33 = vpop.eup %3821  ;;  %v2502_v34 = vadd.f32 1.0, %v3820_v32 }
0x1590   : > { %v2504_v35 = vadd.f32 1.0, %v3822_v33  ;;  %v3824_v36 = vpop.eup %3823 }
0x1591   : > { %v3826_v37 = vpop.eup %3825  ;;  %v2503_v41 = vadd.f32 1.0, %v3824_v36  ;;  %v2506_v42 = vmul.f32 %v2502_v34, %v2490_v44 }
0x1592   : > { %v2505_v45 = vadd.f32 1.0, %v3826_v37  ;;  %v2508_v46 = vmul.f32 %v2504_v35, %v2492_v38 }
0x1593   : > { %v2507_v47 = vmul.f32 %v2503_v41, %v2491_v39  ;;  %v2510_v51 = vpack.c.bf16 %v2506_v42, %v2506_v42 }
0x1594   : > { %v2509_v49 = vmul.f32 %v2505_v45, %v2493_v43  ;;  %v2512_v53 = vpack.c.bf16 %v2508_v46, %v2508_v46 }
0x1595   : > { %v2511_v50 = vpack.c.bf16 %v2507_v47, %v2507_v47 }
0x1596   : > { %v2513_v52 = vpack.c.bf16 %v2509_v49, %v2509_v49 }
0x1597   : > { %2812 = vmatprep.mubr.bf16.mxu0 %v2511_v50 }
0x1598   : > { %2852 = vmatprep.mubr.bf16.mxu1 %v2513_v52  ;;  %2813 = vmatmul.mubr.bf16.vlgmr.msra.gmra.mxu0 %v2510_v51 }
0x1599   : > { %2853 = vmatmul.mubr.bf16.vlgmr.msra.gmra.mxu1 %v2512_v53 }
0x1658   : > { %v3295_v56 = vpop.f32.mrf.mxu0 }
0x1659   : > { %v3317_v23 = vpop.f32.mrf.mxu1 }
0x165a   : > { %v3296_v58 = vpop.f32.mrf.mxu0 }
0x165b   : > { %v3297_v59 = vadd.f32 %v3296_v58, %v3295_v56  ;;  %v3318_v40 = vpop.f32.mrf.mxu1 }
0x165c   : > { %v3298_v60 = vpop.f32.mrf.mxu0  ;;  %v3319_v62 = vadd.f32 %v3318_v40, %v3317_v23 }
0x165d   : > { %v2815_v61 = vadd.f32 %v3297_v59, %v3180_v57  ;;  %v3320_v63 = vpop.f32.mrf.mxu1 }
0x165e   : > { %v3299_v0 = vpop.f32.mrf.mxu0 }
0x165f   : > { %v2855_v1 = vadd.f32 %v3319_v62, %v2815_v61  ;;  %v3321_v3 = vpop.f32.mrf.mxu1  ;;  %2865 = sbr.rel (%p3213_p1) target bundleno = 5733 (0x1665), region = 112 }
0x1661   : > { %v2860_v4 = vadd.f32 %v2855_v1, %v4754_v54 }
0x1663   : > { %2861 = vst [vmem:[#allocation2] sm:$0xff] %v2860_v4 }
0x1664   : > { %2866 = vst [vmem:[%s4504_s7] sm:$0xff] %v2860_v4 }
0x1665 PF: > { %s4944_s6 = sld [smem:[#allocation25_spill]]  ;;  %s2881_s15 = sshll.u32 %s4504_s7, 4  ;;  %s2882_s15 = int_to_ptr.vmem [resolvable:$true] %s2881_s15 }
0x1666   : > { %s4945_s13 = sld [smem:[#allocation36_spill]]  ;;  %s2868_s11 = scalar_lea.sflag [#allocation5], %s4480_s5 }
0x1667   : > { %s4063_s1 = scalar_lea.vmem %s2882_s15, 128  ;;  %p4946_p8 = scmp.ne.s32.totalorder %s4940_s18, 0 }
0x1668   : > { %p4064_p2 = scmp.ne.s32.totalorder %s2882_s15, %s4063_s1  ;;  %s4203_s24 = smov [#allocation18]  }
0x1669   : > { %s4067_s3 = sshll.u32 %s4203_s24, 4  ;;  %s4068_s3 = int_to_ptr.vmem [resolvable:$false] %s4067_s3 }
0x166a   : > { %p4065_p10 = pnand %p4064_p2, %p4946_p8  ;;  %s4069_s14 = scalar_lea.vmem %s4068_s3, 256 }
0x166b   : > { %s3215_s8 = sshll.u32 %s4944_s6, 7  ;;  %p4070_p12 = scmp.lt.s32.totalorder %s2882_s15, %s4068_s3 }
0x166c   : > { %s2879_s16 = scalar_lea.hbm %s4945_s13, %s3215_s8  ;;  %p4066_p11 = pneg %p4065_p10 }
0x166d   : > { %p4071_p13 = scmp.lt.s32.totalorder %s4069_s14, %s4063_s1 }
0x166f   : > { %p4072_p0 = por %p4071_p13, %p4070_p12 }
0x1671   : > { %p4073_p5 = pnand %p4072_p0, %p4066_p11 }
0x1673   : > { %4076 = shalt.err (!%p4073_p5)
}
0x1674   : > { %s4077_s4 = scalar_lea.hbm %s2879_s16, 128  ;;  %s4081_s17 = scalar_lea.hbm %s4945_s13, 256 }
0x1675   : > { %p4078_p4 = scmp.ne.s32.totalorder %s2879_s16, %s4077_s4  ;;  %p4082_p6 = scmp.lt.s32.totalorder %s2879_s16, %s4945_s13 }
0x1676   : > { %p4083_p3 = scmp.lt.s32.totalorder %s4081_s17, %s4077_s4 }
0x1677   : > { %p4079_p7 = pnand %p4078_p4, %p4946_p8 }
0x1678   : > { %p4084_p1 = por %p4083_p3, %p4082_p6 }
0x1679   : > { %p4080_p9 = pneg %p4079_p7 }
0x167b   : > { %p4085_p2 = pnand %p4084_p1, %p4080_p9 }
0x167d   : > { %4088 = shalt.err (!%p4085_p2)
}
0x167e   : > { %3521 = dma.vmem_to_hbm [thread:$0]  (%p4946_p8), %s2882_s15, 128, %s2879_s16, %s2868_s11  }
0x167f PF: > { %p3573_p10 = scmp.ge.s32.totalorder %s4175_s28, 2  ;;  %s2893_s6 = sand.u32 1, %s4147_s21  }
0x1680   : > { %p4947_p11 = scmp.ne.s32.totalorder %s4941_s12, 0  ;;  %s2894_s8 = scalar_lea.sflag [#allocation5], %s2893_s6 }
0x1682   : > { %p3553_p12 = pnand %p3573_p10, %p4947_p11 }
0x1684   : > { %p3554_p13 = pneg %p3553_p12 }
0x1686   : > { %4142 = dma.done.wait (%p3554_p13), %s2894_s8, 128  }
0x1687   : > { %4144 = vsyncadd (%p3554_p13), %s2894_s8, 4294967168  ;;  %s32_s28 = sadd.s32 1, %s4175_s28   ;;  %s4948_s18 = sld [smem:[#allocation26_spill]] }
0x1688   : > { %p29_p0 = scmp.ge.s32.totalorder %s32_s28, 8   ;;  %s4949_s21 = smov %s4151_s22 }
0x1689   : > { %s4950_s22 = smov %s4155_s23  ;;  %s4951_s23 = smov %s4461_s25 }
0x168a   : > { %s4952_s24 = smov %s4167_s26  ;;  %s4953_s25 = smov %s4171_s27 }
0x168b   : > { %s4954_s26 = smov %s4957_s29  ;;  %31 = sbr.rel (!%p29_p0) target bundleno = 22 (0x16), region = 164 }
0x168d   : > { %s4955_s27 = smov %s4948_s18 }
0x1690   :  { %2899 = vsyncpa [#allocation4], 1 }
0x1691   :  { %2901 = vsyncpa [#allocation4 + $0x1], 1 }
0x1692   :  { %2902 = vsyncpa [#allocation7], 1 }
0x1693   :  { %2903 = vsyncpa [#allocation10], 1 }
0x1694   :  { %2904 = vsyncpa [#allocation13], 1 }
0x1695   :  { %2905 = vsyncpa [#allocation16], 1 }
0x1696   :  { %2906 = vsyncpa [#allocation5], 1 }
0x1697   :  { %2908 = vsyncpa [#allocation5 + $0x1], 1 }

</bundles_post_ra>
